<compile_context>
chip_gen: v5e
topology: v5e:2x2
jax: 0.10.0
libtpu: 0.0.40
codegen_flags: <defaults>
</compile_context>

<pallas_src>
import jax
import jax.numpy as jnp
from jax.experimental import pallas as pl
from jax.experimental.pallas import tpu as pltpu


# ----------------------------------------------------------------------------
# Scheduler glue (plain JAX scalars) — linear log-SNR scheduler
# ----------------------------------------------------------------------------
GAMMA_MIN = -10.0
GAMMA_MAX = 10.0


def scheduler_gamma(t):
    # gamma(0) = gamma_max, gamma(1) = gamma_min
    return GAMMA_MAX + (GAMMA_MIN - GAMMA_MAX) * t


def normalize_gamma(gamma):
    return (GAMMA_MAX - gamma) / (GAMMA_MAX - GAMMA_MIN)


def alpha_sigma(gamma):
    return jnp.sqrt(jax.nn.sigmoid(gamma)), jnp.sqrt(jax.nn.sigmoid(-gamma))


# ----------------------------------------------------------------------------
# Pallas kernel: estimate_prediction hot path (gamma-conditioned MLP, M-folded)
# ----------------------------------------------------------------------------
def _denoise_kernel(
    x_ref,     # (TM, D)  VMEM bf16 : (x * mask) rows for this M tile
    cond_ref,  # (TM, Hd) VMEM f32  : b1 + norm_gamma * g1 per row
    w1_ref,    # (D, Hd)  VMEM bf16 : resident across all grid steps
    w2_ref,    # (Hd, D)  VMEM bf16 : resident across all grid steps
    b2_ref,    # (1, D)   VMEM f32  : resident
    out_ref,   # (TM, D)  VMEM      : lane-dense output tile
):
    # Layer 1 on the MXU, f32 accumulation; tanh on the EUP (free slot).
    h = jnp.dot(x_ref[...], w1_ref[...], preferred_element_type=jnp.float32)
    h = jnp.tanh(h + cond_ref[...])
    # Layer 2: cast to bf16 only as the immediate MXU LHS (no scratch round-trip).
    p = jnp.dot(h.astype(jnp.bfloat16), w2_ref[...],
                preferred_element_type=jnp.float32)
    out_ref[...] = (p + b2_ref[...]).astype(out_ref.dtype)   # post_func = identity


def _pallas_estimate(xm, cond, w1, w2, b2, out_dtype, tm=256):
    """xm: (M, D) bf16; cond: (M, Hd) f32. Returns (M, D) out_dtype."""
    M, D = xm.shape
    Hd = w1.shape[1]
    assert D % 128 == 0, "feature dim must be lane-aligned (multiple of 128)"

    # M tile: 256 (native v6e/v7x MXU tile) when there is enough work, else the
    # whole (8-aligned) M as a single full-array block.
    TM = tm if M >= tm else max(8, ((M + 7) // 8) * 8)
    Mp = ((M + TM - 1) // TM) * TM
    if Mp != M:  # zero-pad rows; padded rows are finite and sliced off below
        xm = jnp.pad(xm, ((0, Mp - M), (0, 0)))
        cond = jnp.pad(cond, ((0, Mp - M), (0, 0)))

    out = pl.pallas_call(
        _denoise_kernel,
        out_shape=jax.ShapeDtypeStruct((Mp, D), out_dtype),
        grid=(Mp // TM,),
        in_specs=[
            pl.BlockSpec((TM, D),  lambda i: (i, 0)),   # x*mask slab (streamed)
            pl.BlockSpec((TM, Hd), lambda i: (i, 0)),   # conditioning bias slab
            pl.BlockSpec((D, Hd),  lambda i: (0, 0)),   # W1 resident
            pl.BlockSpec((Hd, D),  lambda i: (0, 0)),   # W2 resident
            pl.BlockSpec((1, D),   lambda i: (0, 0)),   # b2 resident
        ],
        out_specs=pl.BlockSpec((TM, D), lambda i: (i, 0)),
        compiler_params=pltpu.CompilerParams(
            dimension_semantics=("parallel",),
            vmem_limit_bytes=32 * 1024 * 1024,  # usage ~4.5 MB at TM=256
        ),
    )(xm, cond, w1, w2, b2)
    return out[:M]


# ----------------------------------------------------------------------------
# JAX wrappers mirroring BaseSampler.estimate_prediction
# ----------------------------------------------------------------------------
@jax.jit
def estimate_prediction_steps(in_data_steps, steps, mask, params):
    """Chunked variant: predictions for a chunk of timesteps in one kernel call.

    in_data_steps: (S, B, C, H, W) f32; steps: (S,) in (0, 1]; mask: (B, C, H, W).
    """
    S, B, C, H, W = in_data_steps.shape
    D = C * H * W
    w1, b1, g1, w2, b2 = params
    Hd = w1.shape[1]

    gamma = scheduler_gamma(steps.astype(jnp.float32))          # (S,)
    ng = normalize_gamma(gamma)                                 # (S,)

    # pre_func = identity. The mask multiply fuses with the bf16 cast in one
    # elementwise XLA fusion (no extra HBM pass).
    x = in_data_steps.reshape(S, B, D)
    m = mask.reshape(1, B, D)
    xm = (x * m).astype(jnp.bfloat16).reshape(S * B, D)

    # Per-row conditioning bias: cond[s*B + b, :] = b1 + ng[s] * g1   (f32)
    cond = b1[None, :, :] + ng[:, None, None] * g1[None, :, :]  # (S, 1, Hd)
    cond = jnp.broadcast_to(cond, (S, B, Hd)).reshape(S * B, Hd)

    out = _pallas_estimate(xm, cond, w1, w2, b2, in_data_steps.dtype)
    return out.reshape(S, B, C, H, W)                           # post_func = identity


@jax.jit
def estimate_prediction(in_data, step, mask, params):
    """Single-step BaseSampler.estimate_prediction (NCHW input, as in PyTorch)."""
    gamma = scheduler_gamma(step)
    alpha, sigma = alpha_sigma(gamma)   # computed as in torch; defaults ignore them
    del alpha, sigma
    preds = estimate_prediction_steps(
        in_data[None], jnp.reshape(step, (1,)).astype(jnp.float32), mask, params)
    return preds[0]


def reference_estimate(in_data_steps, steps, mask, params):
    """Pure-JAX reference (same dtype plan) for correctness checking."""
    S, B, C, H, W = in_data_steps.shape
    D = C * H * W
    w1, b1, g1, w2, b2 = params
    ng = normalize_gamma(scheduler_gamma(steps.astype(jnp.float32)))
    xm = (in_data_steps.reshape(S, B, D) * mask.reshape(1, B, D)).astype(jnp.bfloat16)
    h = jnp.tanh(
        jnp.einsum("sbd,dh->sbh", xm, w1, preferred_element_type=jnp.float32)
        + b1[None] + ng[:, None, None] * g1[None])
    p = jnp.einsum("sbh,hd->sbd", h.astype(jnp.bfloat16), w2,
                   preferred_element_type=jnp.float32) + b2[None]
    return p.astype(in_data_steps.dtype).reshape(S, B, C, H, W)


def init_denoising_network_params(key, D, hidden):
    """Deterministic synthetic denoising-network parameters (bf16 weights)."""
    k1, k2, k3 = jax.random.split(key, 3)
    w1 = (jax.random.normal(k1, (D, hidden), jnp.float32)
          * (1.0 / jnp.sqrt(D))).astype(jnp.bfloat16)
    b1 = jnp.zeros((1, hidden), jnp.float32)
    g1 = jax.random.normal(k2, (1, hidden), jnp.float32) * 0.1
    w2 = (jax.random.normal(k3, (hidden, D), jnp.float32)
          * (1.0 / jnp.sqrt(hidden))).astype(jnp.bfloat16)
    b2 = jnp.zeros((1, D), jnp.float32)
    return (w1, b1, g1, w2, b2)


if __name__ == "__main__":
    key = jax.random.PRNGKey(0)
    k_x, k_p = jax.random.split(key)

    B, C, H, W = 2, 4, 16, 16
    D = C * H * W                      # 1024, lane-aligned
    HIDDEN = 256                       # multiple of 256: aligned to v6e/v7x MXU
    TIMESTEPS = 250

    # generate_prior_sample equivalent (deterministic via PRNGKey)
    prior_sample = jax.random.normal(k_x, (B, C, H, W), jnp.float32)
    mask = jnp.ones((B, C, H, W), jnp.float32)
    params = init_denoising_network_params(k_p, D, HIDDEN)

    # One timestep of the (sub-class) sampling loop: t = timesteps / timesteps
    step = jnp.float32(TIMESTEPS / TIMESTEPS)
    prediction = jax.block_until_ready(
        estimate_prediction(prior_sample, step, mask, params))
    assert prediction.shape == (B, C, H, W)
    assert prediction.dtype == jnp.float32
    assert bool(jnp.all(jnp.isfinite(prediction)))

    # Chunk of timesteps in one call: S*B rows folded into the MXU M dimension.
    S = 8
    steps = jnp.arange(TIMESTEPS, TIMESTEPS - S, -1, dtype=jnp.float32) / TIMESTEPS
    in_chunk = jnp.broadcast_to(prior_sample, (S, B, C, H, W))
    preds = jax.block_until_ready(
        estimate_prediction_steps(in_chunk, steps, mask, params))
    assert preds.shape == (S, B, C, H, W)
    assert bool(jnp.all(jnp.isfinite(preds)))

    # Chunk step 0 uses the same t=1.0 input -> must match the single-step path.
    assert bool(jnp.allclose(preds[0], prediction, atol=1e-3, rtol=1e-3))

    # Check against a pure-JAX reference with the same dtype plan.
    ref = reference_estimate(in_chunk, steps, mask, params)
    assert bool(jnp.allclose(preds, ref, atol=2e-2, rtol=2e-2))

    print("KERNEL_OK")
</pallas_src>

<mosaic_0001>
module attributes {stable_mosaic.version = 11 : i64} {
  func.func @_denoise_kernel(%arg0: i32, %arg1: memref<8x1024xbf16, #tpu.memory_space<vmem>>, %arg2: memref<8x256xf32, #tpu.memory_space<vmem>>, %arg3: memref<1024x256xbf16, #tpu.memory_space<vmem>>, %arg4: memref<256x1024xbf16, #tpu.memory_space<vmem>>, %arg5: memref<1x1024xf32, #tpu.memory_space<vmem>>, %arg6: memref<8x1024xf32, #tpu.memory_space<vmem>>) attributes {dimension_semantics = [#tpu.dimension_semantics<parallel>], iteration_bounds = array<i64: 1>, scalar_prefetch = 0 : i64, scratch_operands = 0 : i64, tpu.core_type = #tpu.core_type<tc>, window_params = [{transform_indices = @transform_0, window_bounds = array<i64: 8, 1024>}, {transform_indices = @transform_1, window_bounds = array<i64: 8, 256>}, {pipeline_mode = #tpu.pipeline_mode<synchronous>, transform_indices = @transform_2, window_bounds = array<i64: 1024, 256>}, {pipeline_mode = #tpu.pipeline_mode<synchronous>, transform_indices = @transform_3, window_bounds = array<i64: 256, 1024>}, {pipeline_mode = #tpu.pipeline_mode<synchronous>, transform_indices = @transform_4, window_bounds = array<i64: 1, 1024>}, {transform_indices = @transform_5, window_bounds = array<i64: 8, 1024>}]} {
    %c0 = arith.constant 0 : index
    %c0_0 = arith.constant 0 : index
    %0 = vector.load %arg1[%c0, %c0_0] : memref<8x1024xbf16, #tpu.memory_space<vmem>>, vector<8x1024xbf16>
    %c0_1 = arith.constant 0 : index
    %c0_2 = arith.constant 0 : index
    %1 = vector.load %arg3[%c0_1, %c0_2] : memref<1024x256xbf16, #tpu.memory_space<vmem>>, vector<1024x256xbf16>
    %cst = arith.constant dense<0.000000e+00> : vector<8x256xf32>
    %2 = tpu.matmul %0, %1, %cst {dimension_numbers = #tpu.dot_dimension_numbers<[1], [0], [0], [1], [0, 0, 1, 1], [], []>} : vector<8x1024xbf16>, vector<1024x256xbf16>, vector<8x256xf32> -> vector<8x256xf32>
    %c0_3 = arith.constant 0 : index
    %c0_4 = arith.constant 0 : index
    %3 = vector.load %arg2[%c0_3, %c0_4] : memref<8x256xf32, #tpu.memory_space<vmem>>, vector<8x256xf32>
    %4 = arith.addf %2, %3 : vector<8x256xf32>
    %5 = math.tanh %4 : vector<8x256xf32>
    %6 = arith.truncf %5 : vector<8x256xf32> to vector<8x256xbf16>
    %c0_5 = arith.constant 0 : index
    %c0_6 = arith.constant 0 : index
    %7 = vector.load %arg4[%c0_5, %c0_6] : memref<256x1024xbf16, #tpu.memory_space<vmem>>, vector<256x1024xbf16>
    %cst_7 = arith.constant dense<0.000000e+00> : vector<8x1024xf32>
    %8 = tpu.matmul %6, %7, %cst_7 {dimension_numbers = #tpu.dot_dimension_numbers<[1], [0], [0], [1], [0, 0, 1, 1], [], []>} : vector<8x256xbf16>, vector<256x1024xbf16>, vector<8x1024xf32> -> vector<8x1024xf32>
    %c0_8 = arith.constant 0 : index
    %c0_9 = arith.constant 0 : index
    %9 = vector.load %arg5[%c0_8, %c0_9] : memref<1x1024xf32, #tpu.memory_space<vmem>>, vector<1x1024xf32>
    %10 = vector.broadcast %9 : vector<1x1024xf32> to vector<8x1024xf32>
    %11 = arith.addf %8, %10 : vector<8x1024xf32>
    %c0_10 = arith.constant 0 : index
    %c0_11 = arith.constant 0 : index
    %12 = vector.load %arg6[%c0_10, %c0_11] : memref<8x1024xf32, #tpu.memory_space<vmem>>, vector<8x1024xf32>
    tpu.vector_store %arg6[%c0_10, %c0_11], %11 {strides = array<i32>} : memref<8x1024xf32, #tpu.memory_space<vmem>>, vector<8x1024xf32>,
    return
  }
  func.func @transform_0(%arg0: i32) -> (i32, i32) {
    %c0_i32 = arith.constant 0 : i32
    %c0_i32_0 = arith.constant 0 : i32
    return %arg0, %c0_i32 : i32, i32
  }
  func.func @transform_1(%arg0: i32) -> (i32, i32) {
    %c0_i32 = arith.constant 0 : i32
    %c0_i32_0 = arith.constant 0 : i32
    return %arg0, %c0_i32 : i32, i32
  }
  func.func @transform_2(%arg0: i32) -> (i32, i32) {
    %c0_i32 = arith.constant 0 : i32
    %c0_i32_0 = arith.constant 0 : i32
    %c0_i32_1 = arith.constant 0 : i32
    return %c0_i32, %c0_i32_0 : i32, i32
  }
  func.func @transform_3(%arg0: i32) -> (i32, i32) {
    %c0_i32 = arith.constant 0 : i32
    %c0_i32_0 = arith.constant 0 : i32
    %c0_i32_1 = arith.constant 0 : i32
    return %c0_i32, %c0_i32_0 : i32, i32
  }
  func.func @transform_4(%arg0: i32) -> (i32, i32) {
    %c0_i32 = arith.constant 0 : i32
    %c0_i32_0 = arith.constant 0 : i32
    %c0_i32_1 = arith.constant 0 : i32
    return %c0_i32, %c0_i32_0 : i32, i32
  }
  func.func @transform_5(%arg0: i32) -> (i32, i32) {
    %c0_i32 = arith.constant 0 : i32
    %c0_i32_0 = arith.constant 0 : i32
    return %arg0, %c0_i32 : i32, i32
  }
}

</mosaic_0001>

<bundles_post_ra>
// kernel: estimate_prediction_steps.1
= control target key start
LH: loop header
LB: loop body
LE: loop exit
PB: predicated region body
PF: predicated region fallthrough
CT: control target
= control target key end

     0   :  { %10 = vsyncpa [#allocation3], 0  ;;  %s3567_s0 = inlined_call_operand.vmem [shape: bf16[8,1024], index: 0, kind: input, shape index: {}]   ;;  %s3568_s1 = inlined_call_operand.vmem [shape: f32[8,256], index: 1, kind: input, shape index: {}]   ;;  %s3569_s2 = inlined_call_operand.hbm [shape: bf16[1024,256], index: 2, kind: input, shape index: {}]   ;;  %s3570_s3 = inlined_call_operand.hbm [shape: bf16[256,1024], index: 3, kind: input, shape index: {}]   ;;  %s3571_s4 = inlined_call_operand.vmem [shape: f32[1,1024], index: 4, kind: input, shape index: {}]   ;;  %s3572_s5 = inlined_call_operand.vmem [shape: f32[8,1024], index: 5, kind: output, shape index: {}]  }
   0x1   :  { %s20_s20 = sshll.u32 %s3569_s2, 4  ;;  %s21_s20 = int_to_ptr.hbm [resolvable:$true] %s20_s20 }
   0x2   :  { %11 = vsyncpa [#allocation5], 0  ;;  %s3416_s21 = smov [#allocation2]   ;;  %s33_s25 = sshll.u32 %s3570_s3, 4  ;;  %s34_s25 = int_to_ptr.hbm [resolvable:$true] %s33_s25 }
   0x3   :  { %s22_s22 = sshll.u32 %s3416_s21, 4  ;;  %s3417_s26 = smov 128   ;;  %s23_s22 = int_to_ptr.vmem [resolvable:$true] %s22_s22 }
   0x4   :  { %s3418_s27 = smov 8   ;;  %s3419_s28 = smov [#allocation4]  }
   0x5   :  { %28 = dma.hbm_to_vmem [thread:$0]  %s21_s20, 16384, %s23_s22, [#allocation3], %s3417_s26, %s3417_s26, %s3418_s27  }
   0x6   :  { %s35_s29 = sshll.u32 %s3419_s28, 4  ;;  %s3420_s30 = smov 512   ;;  %s36_s29 = int_to_ptr.vmem [resolvable:$true] %s35_s29 }
   0x7   :  { %s3421_s6 = smov 32  }
   0x8   :  { %41 = dma.hbm_to_vmem [thread:$0]  %s34_s25, 16384, %s36_s29, [#allocation5], %s3420_s30, %s3420_s30, %s3421_s6  }
   0x9   :  { %3412 = dma.done.wait [#allocation3], 16384  }
   0xa   :  { %3413 = vsyncadd [#allocation3], 4294950912 }
   0xb   :  { %3414 = dma.done.wait [#allocation5], 16384  }
   0xc   :  { %3415 = vsyncadd [#allocation5], 4294950912  ;;  %v2132_v0 = vld [vmem:[#allocation2 + $0x70] sm:$0xf]  ;;  %v3113_v1 = vld [vmem:[#allocation2 + $0x74] sm:$0xf0] }
   0xd   :  { %v2196_v2 = vld [vmem:[#allocation2 + $0xf0] sm:$0xf]  ;;  %v2133_v3 = vor.u32 %v3113_v1, %v2132_v0  ;;  %v3129_v4 = vld [vmem:[#allocation2 + $0xf4] sm:$0xf0]  ;;  %v2124_v11 = vld [vmem:[#allocation2 + $0x60] sm:$0xf] }
   0xe   :  { %v2260_v5 = vld [vmem:[#allocation2 + $0x170] sm:$0xf]  ;;  %v3145_v6 = vld [vmem:[#allocation2 + $0x174] sm:$0xf0]  ;;  %v2197_v7 = vor.u32 %v3129_v4, %v2196_v2  ;;  %v3111_v13 = vld [vmem:[#allocation2 + $0x64] sm:$0xf0] }
   0xf   :  { %v2261_v8 = vor.u32 %v3145_v6, %v2260_v5  ;;  %v2324_v9 = vld [vmem:[#allocation2 + $0x1f0] sm:$0xf]  ;;  %v3161_v10 = vld [vmem:[#allocation2 + $0x1f4] sm:$0xf0]  ;;  %854 = vmatpush.bf16.msra.mxu0 %v2133_v3  ;;  %v2188_v14 = vld [vmem:[#allocation2 + $0xe0] sm:$0xf]  ;;  %v2125_v16 = vor.u32 %v3111_v13, %v2124_v11 }
  0x10   :  { %v2325_v12 = vor.u32 %v3161_v10, %v2324_v9  ;;  %v3127_v15 = vld [vmem:[#allocation2 + $0xe4] sm:$0xf0]  ;;  %867 = vmatpush.bf16.msra.mxu1 %v2197_v7  ;;  %v2252_v18 = vld [vmem:[#allocation2 + $0x160] sm:$0xf]  ;;  %v2116_v23 = vld [vmem:[#allocation2 + $0x50] sm:$0xf] }
  0x11   :  { %880 = vmatpush.bf16.msra.mxu2 %v2261_v8  ;;  %v2189_v17 = vor.u32 %v3127_v15, %v2188_v14  ;;  %v3143_v19 = vld [vmem:[#allocation2 + $0x164] sm:$0xf0]  ;;  %v2316_v20 = vld [vmem:[#allocation2 + $0x1e0] sm:$0xf]  ;;  %v3109_v24 = vld [vmem:[#allocation2 + $0x54] sm:$0xf0] }
  0x12   :  { %893 = vmatpush.bf16.msra.mxu3 %v2325_v12  ;;  %v2253_v21 = vor.u32 %v3143_v19, %v2252_v18  ;;  %v3159_v22 = vld [vmem:[#allocation2 + $0x1e4] sm:$0xf0]  ;;  %v2180_v26 = vld [vmem:[#allocation2 + $0xd0] sm:$0xf]  ;;  %v3125_v27 = vld [vmem:[#allocation2 + $0xd4] sm:$0xf0]  ;;  %v2117_v29 = vor.u32 %v3109_v24, %v2116_v23 }
  0x13   :  { %v2317_v25 = vor.u32 %v3159_v22, %v2316_v20  ;;  %v2244_v28 = vld [vmem:[#allocation2 + $0x150] sm:$0xf]  ;;  %855 = vmatpush.bf16.msra.mxu0 %v2125_v16  ;;  %v3141_v30 = vld [vmem:[#allocation2 + $0x154] sm:$0xf0]  ;;  %v2181_v33 = vor.u32 %v3125_v27, %v2180_v26  ;;  %v2108_v35 = vld [vmem:[#allocation2 + $0x40] sm:$0xf] }
  0x14   :  { %v2308_v31 = vld [vmem:[#allocation2 + $0x1d0] sm:$0xf]  ;;  %v3157_v32 = vld [vmem:[#allocation2 + $0x1d4] sm:$0xf0]  ;;  %868 = vmatpush.bf16.msra.mxu1 %v2189_v17  ;;  %v2245_v34 = vor.u32 %v3141_v30, %v2244_v28  ;;  %v3107_v36 = vld [vmem:[#allocation2 + $0x44] sm:$0xf0] }
  0x15   :  { %881 = vmatpush.bf16.msra.mxu2 %v2253_v21  ;;  %v2172_v37 = vld [vmem:[#allocation2 + $0xc0] sm:$0xf]  ;;  %v2309_v38 = vor.u32 %v3157_v32, %v2308_v31  ;;  %v3123_v39 = vld [vmem:[#allocation2 + $0xc4] sm:$0xf0]  ;;  %v2109_v44 = vor.u32 %v3107_v36, %v2108_v35  ;;  %v2100_v47 = vld [vmem:[#allocation2 + $0x30] sm:$0xf] }
  0x16   :  { %894 = vmatpush.bf16.msra.mxu3 %v2317_v25  ;;  %v2236_v40 = vld [vmem:[#allocation2 + $0x140] sm:$0xf]  ;;  %v3139_v41 = vld [vmem:[#allocation2 + $0x144] sm:$0xf0]  ;;  %v2173_v45 = vor.u32 %v3123_v39, %v2172_v37  ;;  %v3105_v48 = vld [vmem:[#allocation2 + $0x34] sm:$0xf0] }
  0x17   :  { %v2300_v42 = vld [vmem:[#allocation2 + $0x1c0] sm:$0xf]  ;;  %v3155_v43 = vld [vmem:[#allocation2 + $0x1c4] sm:$0xf0]  ;;  %856 = vmatpush.bf16.msra.mxu0 %v2117_v29  ;;  %v2237_v46 = vor.u32 %v3139_v41, %v2236_v40  ;;  %v2164_v49 = vld [vmem:[#allocation2 + $0xb0] sm:$0xf]  ;;  %v2101_v56 = vor.u32 %v3105_v48, %v2100_v47 }
  0x18   :  { %869 = vmatpush.bf16.msra.mxu1 %v2181_v33  ;;  %v2301_v50 = vor.u32 %v3155_v43, %v2300_v42  ;;  %v3121_v51 = vld [vmem:[#allocation2 + $0xb4] sm:$0xf0]  ;;  %v2228_v52 = vld [vmem:[#allocation2 + $0x130] sm:$0xf]  ;;  %v2092_v59 = vld [vmem:[#allocation2 + $0x20] sm:$0xf] }
  0x19   :  { %882 = vmatpush.bf16.msra.mxu2 %v2245_v34  ;;  %v3137_v53 = vld [vmem:[#allocation2 + $0x134] sm:$0xf0]  ;;  %v2292_v54 = vld [vmem:[#allocation2 + $0x1b0] sm:$0xf]  ;;  %v2165_v57 = vor.u32 %v3121_v51, %v2164_v49  ;;  %v3103_v60 = vld [vmem:[#allocation2 + $0x24] sm:$0xf0] }
  0x1a   :  { %895 = vmatpush.bf16.msra.mxu3 %v2309_v38  ;;  %v3153_v55 = vld [vmem:[#allocation2 + $0x1b4] sm:$0xf0]  ;;  %v2229_v58 = vor.u32 %v3137_v53, %v2228_v52  ;;  %v2156_v61 = vld [vmem:[#allocation2 + $0xa0] sm:$0xf]  ;;  %v3119_v63 = vld [vmem:[#allocation2 + $0xa4] sm:$0xf0]  ;;  %v2093_v4 = vor.u32 %v3103_v60, %v2092_v59 }
  0x1b   :  { %857 = vmatpush.bf16.msra.mxu0 %v2109_v44  ;;  %v2293_v62 = vor.u32 %v3153_v55, %v2292_v54  ;;  %v2220_v0 = vld [vmem:[#allocation2 + $0x120] sm:$0xf]  ;;  %v3135_v1 = vld [vmem:[#allocation2 + $0x124] sm:$0xf0]  ;;  %v2157_v5 = vor.u32 %v3119_v63, %v2156_v61  ;;  %v2084_v7 = vld [vmem:[#allocation2 + $0x10] sm:$0xf] }
  0x1c   :  { %870 = vmatpush.bf16.msra.mxu1 %v2173_v45  ;;  %v2284_v2 = vld [vmem:[#allocation2 + $0x1a0] sm:$0xf]  ;;  %v3151_v3 = vld [vmem:[#allocation2 + $0x1a4] sm:$0xf0]  ;;  %v2221_v6 = vor.u32 %v3135_v1, %v2220_v0  ;;  %v3101_v8 = vld [vmem:[#allocation2 + $0x14] sm:$0xf0] }
  0x1d   :  { %883 = vmatpush.bf16.msra.mxu2 %v2237_v46  ;;  %v2148_v9 = vld [vmem:[#allocation2 + $0x90] sm:$0xf]  ;;  %v2285_v10 = vor.u32 %v3151_v3, %v2284_v2  ;;  %v3117_v11 = vld [vmem:[#allocation2 + $0x94] sm:$0xf0]  ;;  %v2085_v16 = vor.u32 %v3101_v8, %v2084_v7  ;;  %v2076_v17 = vld [vmem:[#allocation2] sm:$0xf] }
  0x1e   :  { %896 = vmatpush.bf16.msra.mxu3 %v2301_v50  ;;  %v2212_v12 = vld [vmem:[#allocation2 + $0x110] sm:$0xf]  ;;  %v3133_v13 = vld [vmem:[#allocation2 + $0x114] sm:$0xf0]  ;;  %v3099_v18 = vld [vmem:[#allocation2 + $0x4] sm:$0xf0]  ;;  %v2149_v19 = vor.u32 %v3117_v11, %v2148_v9 }
  0x1f   :  { %858 = vmatpush.bf16.msra.mxu0 %v2101_v56  ;;  %v2276_v14 = vld [vmem:[#allocation2 + $0x190] sm:$0xf]  ;;  %v3149_v15 = vld [vmem:[#allocation2 + $0x194] sm:$0xf0]  ;;  %v2213_v20 = vor.u32 %v3133_v13, %v2212_v12  ;;  %v2140_v21 = vld [vmem:[#allocation2 + $0x80] sm:$0xf]  ;;  %v2077_v31 = vor.u32 %v3099_v18, %v2076_v17 }
  0x20   :  { %871 = vmatpush.bf16.msra.mxu1 %v2165_v57  ;;  %v3115_v22 = vld [vmem:[#allocation2 + $0x84] sm:$0xf0]  ;;  %v2204_v23 = vld [vmem:[#allocation2 + $0x100] sm:$0xf]  ;;  %v2277_v24 = vor.u32 %v3149_v15, %v2276_v14  ;;  %v2388_v28 = vld [vmem:[#allocation2 + $0x270] sm:$0xf] }
  0x21   :  { %884 = vmatpush.bf16.msra.mxu2 %v2229_v58  ;;  %v3131_v25 = vld [vmem:[#allocation2 + $0x104] sm:$0xf0]  ;;  %v2268_v26 = vld [vmem:[#allocation2 + $0x180] sm:$0xf]  ;;  %v3177_v29 = vld [vmem:[#allocation2 + $0x274] sm:$0xf0]  ;;  %v2141_v35 = vor.u32 %v3115_v22, %v2140_v21 }
  0x22   :  { %897 = vmatpush.bf16.msra.mxu3 %v2293_v62  ;;  %v3147_v27 = vld [vmem:[#allocation2 + $0x184] sm:$0xf0]  ;;  %v2452_v30 = vld [vmem:[#allocation2 + $0x2f0] sm:$0xf]  ;;  %v3193_v32 = vld [vmem:[#allocation2 + $0x2f4] sm:$0xf0]  ;;  %v2205_v36 = vor.u32 %v3131_v25, %v2204_v23  ;;  %v2389_v40 = vor.u32 %v3177_v29, %v2388_v28 }
  0x23   :  { %859 = vmatpush.bf16.msra.mxu0 %v2093_v4  ;;  %v2516_v33 = vld [vmem:[#allocation2 + $0x370] sm:$0xf]  ;;  %v3209_v34 = vld [vmem:[#allocation2 + $0x374] sm:$0xf0]  ;;  %v2269_v39 = vor.u32 %v3147_v27, %v2268_v26  ;;  %v2453_v41 = vor.u32 %v3193_v32, %v2452_v30  ;;  %v2380_v43 = vld [vmem:[#allocation2 + $0x260] sm:$0xf] }
  0x24   :  { %872 = vmatpush.bf16.msra.mxu1 %v2157_v5  ;;  %v2580_v37 = vld [vmem:[#allocation2 + $0x3f0] sm:$0xf]  ;;  %v3225_v38 = vld [vmem:[#allocation2 + $0x3f4] sm:$0xf0]  ;;  %v2517_v42 = vor.u32 %v3209_v34, %v2516_v33  ;;  %v3175_v44 = vld [vmem:[#allocation2 + $0x264] sm:$0xf0] }
  0x25   :  { %885 = vmatpush.bf16.msra.mxu2 %v2221_v6  ;;  %v2444_v45 = vld [vmem:[#allocation2 + $0x2e0] sm:$0xf]  ;;  %v2581_v46 = vor.u32 %v3225_v38, %v2580_v37  ;;  %v3191_v47 = vld [vmem:[#allocation2 + $0x2e4] sm:$0xf0]  ;;  %v2381_v53 = vor.u32 %v3175_v44, %v2380_v43  ;;  %v2372_v54 = vld [vmem:[#allocation2 + $0x250] sm:$0xf] }
  0x26   :  { %898 = vmatpush.bf16.msra.mxu3 %v2285_v10  ;;  %v2508_v48 = vld [vmem:[#allocation2 + $0x360] sm:$0xf]  ;;  %v3207_v49 = vld [vmem:[#allocation2 + $0x364] sm:$0xf0]  ;;  %v2445_v57 = vor.u32 %v3191_v47, %v2444_v45  ;;  %v3173_v59 = vld [vmem:[#allocation2 + $0x254] sm:$0xf0] }
  0x27   :  { %860 = vmatpush.bf16.msra.mxu0 %v2085_v16  ;;  %v2572_v50 = vld [vmem:[#allocation2 + $0x3e0] sm:$0xf]  ;;  %v3223_v51 = vld [vmem:[#allocation2 + $0x3e4] sm:$0xf0]  ;;  %v2509_v58 = vor.u32 %v3207_v49, %v2508_v48  ;;  %v2436_v60 = vld [vmem:[#allocation2 + $0x2d0] sm:$0xf]  ;;  %v2373_v8 = vor.u32 %v3173_v59, %v2372_v54 }
  0x28   :  { %873 = vmatpush.bf16.msra.mxu1 %v2149_v19  ;;  %v53_v52 = vld [vmem:[%s3567_s0 + $0x8] sm:$0xff]  ;;  %v3189_v61 = vld [vmem:[#allocation2 + $0x2d4] sm:$0xf0]  ;;  %v2573_v62 = vor.u32 %v3223_v51, %v2572_v50  ;;  %v2500_v63 = vld [vmem:[#allocation2 + $0x350] sm:$0xf] }
  0x29   :  { %886 = vmatpush.bf16.msra.mxu2 %v2213_v20  ;;  %v192_v55 = vunpack.c.l.b16 %v53_v52  ;;  %v193_v56 = vunpack.c.h.b16 %v53_v52  ;;  %v3205_v0 = vld [vmem:[#allocation2 + $0x354] sm:$0xf0]  ;;  %v52_v2 = vld [vmem:[%s3567_s0] sm:$0xff]  ;;  %v2564_v3 = vld [vmem:[#allocation2 + $0x3d0] sm:$0xf]  ;;  %v2437_v9 = vor.u32 %v3189_v61, %v2436_v60 }
  0x2a   :  { %899 = vmatpush.bf16.msra.mxu3 %v2277_v24  ;;  %v3221_v4 = vld [vmem:[#allocation2 + $0x3d4] sm:$0xf0]  ;;  %v190_v5 = vunpack.c.l.b16 %v52_v2  ;;  %v191_v7 = vunpack.c.h.b16 %v52_v2  ;;  %v2501_v10 = vor.u32 %v3205_v0, %v2500_v63  ;;  %v2364_v11 = vld [vmem:[#allocation2 + $0x240] sm:$0xf]  ;;  %v3171_v12 = vld [vmem:[#allocation2 + $0x244] sm:$0xf0] }
  0x2b   :  { %861 = vmatpush.bf16.msra.mxu0 %v2077_v31  ;;  %v3461_v1 = vpack.c.b16 %v192_v55, %v192_v55  ;;  %v3466_v6 = vpack.c.b16 %v193_v56, %v193_v56  ;;  %v2428_v13 = vld [vmem:[#allocation2 + $0x2c0] sm:$0xf]  ;;  %v2565_v16 = vor.u32 %v3221_v4, %v2564_v3  ;;  %v3187_v17 = vld [vmem:[#allocation2 + $0x2c4] sm:$0xf0]  ;;  %v2365_v22 = vor.u32 %v3171_v12, %v2364_v11  ;;  %v2356_v25 = vld [vmem:[#allocation2 + $0x230] sm:$0xf] }
  0x2c   :  { %874 = vmatpush.bf16.msra.mxu1 %v2141_v35  ;;  %v3469_v14 = vpack.c.b16 %v190_v5, %v190_v5  ;;  %v3471_v15 = vpack.c.b16 %v191_v7, %v191_v7  ;;  %v2492_v18 = vld [vmem:[#allocation2 + $0x340] sm:$0xf]  ;;  %v3203_v19 = vld [vmem:[#allocation2 + $0x344] sm:$0xf0]  ;;  %v2429_v23 = vor.u32 %v3187_v17, %v2428_v13  ;;  %v3169_v26 = vld [vmem:[#allocation2 + $0x234] sm:$0xf0] }
  0x2d   :  { %887 = vmatpush.bf16.msra.mxu2 %v2205_v36  ;;  %v2556_v20 = vld [vmem:[#allocation2 + $0x3c0] sm:$0xf]  ;;  %v3219_v21 = vld [vmem:[#allocation2 + $0x3c4] sm:$0xf0]  ;;  %v2493_v24 = vor.u32 %v3203_v19, %v2492_v18  ;;  %v2420_v27 = vld [vmem:[#allocation2 + $0x2b0] sm:$0xf]  ;;  %v2357_v34 = vor.u32 %v3169_v26, %v2356_v25 }
  0x2e   :  { %900 = vmatpush.bf16.msra.mxu3 %v2269_v39  ;;  %862 = vmatmul.bf16.vlgmr.msra.gmra.mxu0 %v3469_v14  ;;  %v2557_v28 = vor.u32 %v3219_v21, %v2556_v20  ;;  %v3185_v29 = vld [vmem:[#allocation2 + $0x2b4] sm:$0xf0]  ;;  %v2484_v30 = vld [vmem:[#allocation2 + $0x330] sm:$0xf]  ;;  %v2348_v37 = vld [vmem:[#allocation2 + $0x220] sm:$0xf] }
  0x2f   :  { %906 = vmatpush.bf16.msrb.mxu0 %v2389_v40  ;;  %875 = vmatmul.bf16.vlgmr.msra.gmra.mxu1 %v3471_v15  ;;  %v3201_v31 = vld [vmem:[#allocation2 + $0x334] sm:$0xf0]  ;;  %v2548_v32 = vld [vmem:[#allocation2 + $0x3b0] sm:$0xf]  ;;  %v2421_v35 = vor.u32 %v3185_v29, %v2420_v27  ;;  %v3167_v38 = vld [vmem:[#allocation2 + $0x224] sm:$0xf0] }
  0x30   :  { %919 = vmatpush.bf16.msrb.mxu1 %v2453_v41  ;;  %888 = vmatmul.bf16.vlgmr.msra.gmra.mxu2 %v3461_v1  ;;  %v3217_v33 = vld [vmem:[#allocation2 + $0x3b4] sm:$0xf0]  ;;  %v2485_v36 = vor.u32 %v3201_v31, %v2484_v30  ;;  %v2412_v39 = vld [vmem:[#allocation2 + $0x2a0] sm:$0xf]  ;;  %v3183_v41 = vld [vmem:[#allocation2 + $0x2a4] sm:$0xf0] }
  0x31   :  { %932 = vmatpush.bf16.msrb.mxu2 %v2517_v42  ;;  %901 = vmatmul.bf16.vlgmr.msra.gmra.mxu3 %v3466_v6  ;;  %v2549_v40 = vor.u32 %v3217_v33, %v2548_v32  ;;  %v2476_v42 = vld [vmem:[#allocation2 + $0x320] sm:$0xf]  ;;  %v3199_v43 = vld [vmem:[#allocation2 + $0x324] sm:$0xf0]  ;;  %v2413_v47 = vor.u32 %v3183_v41, %v2412_v39  ;;  %v2340_v49 = vld [vmem:[#allocation2 + $0x210] sm:$0xf] }
  0x32   :  { %945 = vmatpush.bf16.msrb.mxu3 %v2581_v46  ;;  %v2540_v44 = vld [vmem:[#allocation2 + $0x3a0] sm:$0xf]  ;;  %v3215_v45 = vld [vmem:[#allocation2 + $0x3a4] sm:$0xf0]  ;;  %v2349_v46 = vor.u32 %v3167_v38, %v2348_v37  ;;  %v2477_v48 = vor.u32 %v3199_v43, %v2476_v42  ;;  %v3165_v50 = vld [vmem:[#allocation2 + $0x214] sm:$0xf0] }
  0x33   :  { %907 = vmatpush.bf16.msrb.mxu0 %v2381_v53  ;;  %v2404_v51 = vld [vmem:[#allocation2 + $0x290] sm:$0xf]  ;;  %v2541_v52 = vor.u32 %v3215_v45, %v2540_v44  ;;  %v3181_v53 = vld [vmem:[#allocation2 + $0x294] sm:$0xf0]  ;;  %v2341_v59 = vor.u32 %v3165_v50, %v2340_v49  ;;  %v3163_v60 = vld [vmem:[#allocation2 + $0x204] sm:$0xf0] }
  0x34   :  { %920 = vmatpush.bf16.msrb.mxu1 %v2445_v57  ;;  %v2468_v54 = vld [vmem:[#allocation2 + $0x310] sm:$0xf]  ;;  %v3197_v55 = vld [vmem:[#allocation2 + $0x314] sm:$0xf0]  ;;  %v2396_v61 = vld [vmem:[#allocation2 + $0x280] sm:$0xf]  ;;  %v2405_v63 = vor.u32 %v3181_v53, %v2404_v51 }
  0x35   :  { %933 = vmatpush.bf16.msrb.mxu2 %v2509_v58  ;;  %v2532_v56 = vld [vmem:[#allocation2 + $0x390] sm:$0xf]  ;;  %v3213_v57 = vld [vmem:[#allocation2 + $0x394] sm:$0xf0]  ;;  %v2332_v58 = vld [vmem:[#allocation2 + $0x200] sm:$0xf]  ;;  %v2469_v0 = vor.u32 %v3197_v55, %v2468_v54 }
  0x36   :  { %946 = vmatpush.bf16.msrb.mxu3 %v2573_v62  ;;  %v3179_v62 = vld [vmem:[#allocation2 + $0x284] sm:$0xf0]  ;;  %v2460_v2 = vld [vmem:[#allocation2 + $0x300] sm:$0xf]  ;;  %v55_v4 = vld [vmem:[%s3567_s0 + $0x18] sm:$0xff]  ;;  %v2533_v5 = vor.u32 %v3213_v57, %v2532_v56  ;;  %v2333_v13 = vor.u32 %v3163_v60, %v2332_v58 }
  0x37   :  { %908 = vmatpush.bf16.msrb.mxu0 %v2373_v8  ;;  %v3195_v3 = vld [vmem:[#allocation2 + $0x304] sm:$0xf0]  ;;  %v2524_v7 = vld [vmem:[#allocation2 + $0x380] sm:$0xf]  ;;  %v2134_v11 = vld [vmem:[#allocation2 + $0x78] sm:$0xf0]  ;;  %v196_v19 = vunpack.c.l.b16 %v55_v4  ;;  %v2397_v20 = vor.u32 %v3179_v62, %v2396_v61  ;;  %v197_v25 = vunpack.c.h.b16 %v55_v4 }
  0x38   :  { %921 = vmatpush.bf16.msrb.mxu1 %v2437_v9  ;;  %v3211_v8 = vld [vmem:[#allocation2 + $0x384] sm:$0xf0]  ;;  %v54_v9 = vld [vmem:[%s3567_s0 + $0x10] sm:$0xff]  ;;  %v2262_v18 = vld [vmem:[#allocation2 + $0x178] sm:$0xf0]  ;;  %v2461_v21 = vor.u32 %v3195_v3, %v2460_v2 }
  0x39   :  { %934 = vmatpush.bf16.msrb.mxu2 %v2501_v10  ;;  %v3112_v10 = vld [vmem:[#allocation2 + $0x74] sm:$0xf]  ;;  %v2525_v26 = vor.u32 %v3211_v8, %v2524_v7  ;;  %v3110_v31 = vld [vmem:[#allocation2 + $0x64] sm:$0xf]  ;;  %v2126_v32 = vld [vmem:[#allocation2 + $0x68] sm:$0xf0] }
  0x3a   :  { %947 = vmatpush.bf16.msrb.mxu3 %v2565_v16  ;;  %v3128_v12 = vld [vmem:[#allocation2 + $0xf4] sm:$0xf]  ;;  %v2198_v16 = vld [vmem:[#allocation2 + $0xf8] sm:$0xf0]  ;;  %v2137_v27 = vor.u32 %v3112_v10, %v2134_v11  ;;  %v3126_v33 = vld [vmem:[#allocation2 + $0xe4] sm:$0xf]  ;;  %v2129_v43 = vor.u32 %v3110_v31, %v2126_v32 }
  0x3b   :  { %909 = vmatpush.bf16.msrb.mxu0 %v2365_v22  ;;  %v3144_v17 = vld [vmem:[#allocation2 + $0x174] sm:$0xf]  ;;  %v2201_v29 = vor.u32 %v3128_v12, %v2198_v16  ;;  %v3142_v37 = vld [vmem:[#allocation2 + $0x164] sm:$0xf]  ;;  %v2254_v38 = vld [vmem:[#allocation2 + $0x168] sm:$0xf0] }
  0x3c   :  { %922 = vmatpush.bf16.msrb.mxu1 %v2429_v23  ;;  %v3160_v22 = vld [vmem:[#allocation2 + $0x1f4] sm:$0xf]  ;;  %v2326_v23 = vld [vmem:[#allocation2 + $0x1f8] sm:$0xf0]  ;;  %v2265_v30 = vor.u32 %v3144_v17, %v2262_v18  ;;  %v3158_v41 = vld [vmem:[#allocation2 + $0x1e4] sm:$0xf] }
  0x3d   :  { %935 = vmatpush.bf16.msrb.mxu2 %v2493_v24  ;;  %v194_v24 = vunpack.c.l.b16 %v54_v9  ;;  %v2318_v42 = vld [vmem:[#allocation2 + $0x1e8] sm:$0xf0]  ;;  %v3124_v49 = vld [vmem:[#allocation2 + $0xd4] sm:$0xf]  ;;  %v2182_v51 = vld [vmem:[#allocation2 + $0xd8] sm:$0xf0] }
  0x3e   :  { %948 = vmatpush.bf16.msrb.mxu3 %v2557_v28  ;;  %v195_v28 = vunpack.c.h.b16 %v54_v9  ;;  %v2321_v50 = vor.u32 %v3158_v41, %v2318_v42  ;;  %v2246_v53 = vld [vmem:[#allocation2 + $0x158] sm:$0xf0]  ;;  %v3156_v54 = vld [vmem:[#allocation2 + $0x1d4] sm:$0xf]  ;;  %v2185_v57 = vor.u32 %v3124_v49, %v2182_v51  ;;  %v2110_v60 = vld [vmem:[#allocation2 + $0x48] sm:$0xf0] }
  0x3f   :  { %910 = vmatpush.bf16.msrb.mxu0 %v2357_v34  ;;  %v2329_v34 = vor.u32 %v3160_v22, %v2326_v23  ;;  %v3484_v39 = vpack.c.b16 %v194_v24, %v194_v24  ;;  %v2310_v55 = vld [vmem:[#allocation2 + $0x1d8] sm:$0xf0]  ;;  %v3122_v61 = vld [vmem:[#allocation2 + $0xc4] sm:$0xf]  ;;  %v2238_v2 = vld [vmem:[#allocation2 + $0x148] sm:$0xf0] }
  0x40   :  { %923 = vmatpush.bf16.msrb.mxu1 %v2421_v35  ;;  %v3482_v35 = vpack.c.b16 %v196_v19, %v196_v19  ;;  %v3488_v44 = vpack.c.b16 %v195_v28, %v195_v28  ;;  %v2313_v62 = vor.u32 %v3156_v54, %v2310_v55  ;;  %v3154_v3 = vld [vmem:[#allocation2 + $0x1c4] sm:$0xf]  ;;  %v2302_v4 = vld [vmem:[#allocation2 + $0x1c8] sm:$0xf0]  ;;  %v3104_v9 = vld [vmem:[#allocation2 + $0x34] sm:$0xf] }
  0x41   :  { %936 = vmatpush.bf16.msrb.mxu2 %v2485_v36  ;;  %v2190_v36 = vld [vmem:[#allocation2 + $0xe8] sm:$0xf0]  ;;  %v2102_v10 = vld [vmem:[#allocation2 + $0x38] sm:$0xf0]  ;;  %v3120_v11 = vld [vmem:[#allocation2 + $0xb4] sm:$0xf]  ;;  %v2305_v12 = vor.u32 %v3154_v3, %v2302_v4 }
  0x42   :  { %949 = vmatpush.bf16.msrb.mxu3 %v2549_v40  ;;  %v3486_v40 = vpack.c.b16 %v197_v25, %v197_v25  ;;  %v2193_v45 = vor.u32 %v3126_v33, %v2190_v36  ;;  %v3136_v16 = vld [vmem:[#allocation2 + $0x134] sm:$0xf]  ;;  %v2230_v17 = vld [vmem:[#allocation2 + $0x138] sm:$0xf0]  ;;  %v3102_v23 = vld [vmem:[#allocation2 + $0x24] sm:$0xf] }
  0x43   :  { %911 = vmatpush.bf16.msrb.mxu0 %v2349_v46  ;;  %v2257_v46 = vor.u32 %v3142_v37, %v2254_v38  ;;  %v3152_v18 = vld [vmem:[#allocation2 + $0x1b4] sm:$0xf]  ;;  %v2294_v19 = vld [vmem:[#allocation2 + $0x1b8] sm:$0xf0]  ;;  %v2233_v22 = vor.u32 %v3136_v16, %v2230_v17  ;;  %v2094_v24 = vld [vmem:[#allocation2 + $0x28] sm:$0xf0] }
  0x44   :  { %924 = vmatpush.bf16.msrb.mxu1 %v2413_v47  ;;  %v3108_v47 = vld [vmem:[#allocation2 + $0x54] sm:$0xf]  ;;  %v3118_v25 = vld [vmem:[#allocation2 + $0xa4] sm:$0xf]  ;;  %v2286_v31 = vld [vmem:[#allocation2 + $0x1a8] sm:$0xf0]  ;;  %v2097_v32 = vor.u32 %v3102_v23, %v2094_v24 }
  0x45   :  { %937 = vmatpush.bf16.msrb.mxu2 %v2477_v48  ;;  %v2118_v48 = vld [vmem:[#allocation2 + $0x58] sm:$0xf0]  ;;  %v3134_v28 = vld [vmem:[#allocation2 + $0x124] sm:$0xf]  ;;  %v3100_v36 = vld [vmem:[#allocation2 + $0x14] sm:$0xf] }
  0x46   :  { %950 = vmatpush.bf16.msrb.mxu3 %v2541_v52  ;;  %v3140_v52 = vld [vmem:[#allocation2 + $0x154] sm:$0xf]  ;;  %v2121_v56 = vor.u32 %v3108_v47, %v2118_v48  ;;  %v2086_v37 = vld [vmem:[#allocation2 + $0x18] sm:$0xf0]  ;;  %v3098_v49 = vld [vmem:[#allocation2 + $0x4] sm:$0xf] }
  0x47   :  { %912 = vmatpush.bf16.msrb.mxu0 %v2341_v59  ;;  %v2249_v58 = vor.u32 %v3140_v52, %v2246_v53  ;;  %v3106_v59 = vld [vmem:[#allocation2 + $0x44] sm:$0xf]  ;;  %v3116_v38 = vld [vmem:[#allocation2 + $0x94] sm:$0xf]  ;;  %v2150_v42 = vld [vmem:[#allocation2 + $0x98] sm:$0xf0]  ;;  %v2089_v48 = vor.u32 %v3100_v36, %v2086_v37 }
  0x48   :  { %925 = vmatpush.bf16.msrb.mxu1 %v2405_v63  ;;  %v2174_v63 = vld [vmem:[#allocation2 + $0xc8] sm:$0xf0]  ;;  %v2278_v47 = vld [vmem:[#allocation2 + $0x198] sm:$0xf0]  ;;  %v2153_v51 = vor.u32 %v3116_v38, %v2150_v42  ;;  %v3114_v53 = vld [vmem:[#allocation2 + $0x84] sm:$0xf] }
  0x49   :  { %938 = vmatpush.bf16.msrb.mxu2 %v2469_v0  ;;  %v3138_v0 = vld [vmem:[#allocation2 + $0x144] sm:$0xf]  ;;  %v2177_v7 = vor.u32 %v3122_v61, %v2174_v63  ;;  %v2142_v54 = vld [vmem:[#allocation2 + $0x88] sm:$0xf0]  ;;  %v2390_v61 = vld [vmem:[#allocation2 + $0x278] sm:$0xf0] }
  0x4a   :  { %951 = vmatpush.bf16.msrb.mxu3 %v2533_v5  ;;  %v2113_v5 = vor.u32 %v3106_v59, %v2110_v60  ;;  %v2241_v8 = vor.u32 %v3138_v0, %v2238_v2  ;;  %v3130_v55 = vld [vmem:[#allocation2 + $0x104] sm:$0xf]  ;;  %v2270_v59 = vld [vmem:[#allocation2 + $0x188] sm:$0xf0]  ;;  %v3176_v60 = vld [vmem:[#allocation2 + $0x274] sm:$0xf]  ;;  %v2145_v4 = vor.u32 %v3114_v53, %v2142_v54 }
  0x4b   :  { %913 = vmatpush.bf16.msrb.mxu0 %v2333_v13  ;;  %v2166_v13 = vld [vmem:[#allocation2 + $0xb8] sm:$0xf0]  ;;  %v3208_v2 = vld [vmem:[#allocation2 + $0x374] sm:$0xf]  ;;  %v2382_v16 = vld [vmem:[#allocation2 + $0x268] sm:$0xf0] }
  0x4c   :  { %926 = vmatpush.bf16.msrb.mxu1 %v2397_v20  ;;  %v2105_v20 = vor.u32 %v3104_v9, %v2102_v10  ;;  %v2454_v0 = vld [vmem:[#allocation2 + $0x2f8] sm:$0xf0]  ;;  %v2393_v10 = vor.u32 %v3176_v60, %v2390_v61  ;;  %v3190_v17 = vld [vmem:[#allocation2 + $0x2e4] sm:$0xf]  ;;  %v2574_v23 = vld [vmem:[#allocation2 + $0x3e8] sm:$0xf0] }
  0x4d   :  { %939 = vmatpush.bf16.msrb.mxu2 %v2461_v21  ;;  %v2169_v21 = vor.u32 %v3120_v11, %v2166_v13  ;;  %v2518_v3 = vld [vmem:[#allocation2 + $0x378] sm:$0xf0]  ;;  %v3174_v13 = vld [vmem:[#allocation2 + $0x264] sm:$0xf]  ;;  %v3184_v53 = vld [vmem:[#allocation2 + $0x2b4] sm:$0xf] }
  0x4e   :  { %952 = vmatpush.bf16.msrb.mxu3 %v2525_v26  ;;  %914 = vmatmul.bf16.vlgmr.msrb.gmra.mxu0 %v3484_v39  ;;  %v2297_v26 = vor.u32 %v3152_v18, %v2294_v19  ;;  %v2446_v19 = vld [vmem:[#allocation2 + $0x2e8] sm:$0xf0]  ;;  %v2385_v24 = vor.u32 %v3174_v13, %v2382_v16  ;;  %v2566_v36 = vld [vmem:[#allocation2 + $0x3d8] sm:$0xf0]  ;;  %v3170_v42 = vld [vmem:[#allocation2 + $0x244] sm:$0xf] }
  0x4f   :  { %958 = vmatpush.bf16.msra.mxu0 %v2137_v27  ;;  %927 = vmatmul.bf16.vlgmr.msrb.gmra.mxu1 %v3488_v44  ;;  %v2158_v27 = vld [vmem:[#allocation2 + $0xa8] sm:$0xf0]  ;;  %v3164_v13 = vld [vmem:[#allocation2 + $0x214] sm:$0xf]  ;;  %v2342_v16 = vld [vmem:[#allocation2 + $0x218] sm:$0xf0] }
  0x50   :  { %971 = vmatpush.bf16.msra.mxu1 %v2201_v29  ;;  %940 = vmatmul.bf16.vlgmr.msrb.gmra.mxu2 %v3482_v35  ;;  %v2222_v29 = vld [vmem:[#allocation2 + $0x128] sm:$0xf0]  ;;  %v2161_v33 = vor.u32 %v3118_v25, %v2158_v27  ;;  %v2449_v25 = vor.u32 %v3190_v17, %v2446_v19  ;;  %v3172_v27 = vld [vmem:[#allocation2 + $0x254] sm:$0xf]  ;;  %v2406_v19 = vld [vmem:[#allocation2 + $0x298] sm:$0xf0] }
  0x51   :  { %984 = vmatpush.bf16.msra.mxu2 %v2265_v30  ;;  %953 = vmatmul.bf16.vlgmr.msrb.gmra.mxu3 %v3486_v40  ;;  %v3150_v30 = vld [vmem:[#allocation2 + $0x1a4] sm:$0xf]  ;;  %v3180_v17 = vld [vmem:[#allocation2 + $0x294] sm:$0xf] }
  0x52   :  { %997 = vmatpush.bf16.msra.mxu3 %v2329_v34  ;;  %v2225_v34 = vor.u32 %v3134_v28, %v2222_v29  ;;  %v2289_v41 = vor.u32 %v3150_v30, %v2286_v31  ;;  %v2374_v28 = vld [vmem:[#allocation2 + $0x258] sm:$0xf0]  ;;  %v3188_v29 = vld [vmem:[#allocation2 + $0x2d4] sm:$0xf] }
  0x53   :  { %959 = vmatpush.bf16.msra.mxu0 %v2129_v43  ;;  %v3132_v43 = vld [vmem:[#allocation2 + $0x114] sm:$0xf]  ;;  %v2438_v31 = vld [vmem:[#allocation2 + $0x2d8] sm:$0xf0]  ;;  %v2377_v37 = vor.u32 %v3172_v27, %v2374_v28  ;;  %v2334_v28 = vld [vmem:[#allocation2 + $0x208] sm:$0xf0] }
  0x54   :  { %972 = vmatpush.bf16.msra.mxu1 %v2193_v45  ;;  %v2214_v45 = vld [vmem:[#allocation2 + $0x118] sm:$0xf0]  ;;  %v2441_v38 = vor.u32 %v3188_v29, %v2438_v31  ;;  %v3178_v29 = vld [vmem:[#allocation2 + $0x284] sm:$0xf] }
  0x55   :  { %985 = vmatpush.bf16.msra.mxu2 %v2257_v46  ;;  %v3148_v46 = vld [vmem:[#allocation2 + $0x194] sm:$0xf]  ;;  %v2217_v52 = vor.u32 %v3132_v43, %v2214_v45  ;;  %v2366_v43 = vld [vmem:[#allocation2 + $0x248] sm:$0xf0] }
  0x56   :  { %998 = vmatpush.bf16.msra.mxu3 %v2321_v50  ;;  %v2078_v50 = vld [vmem:[#allocation2 + $0x8] sm:$0xf0] }
  0x57   :  { %960 = vmatpush.bf16.msra.mxu0 %v2121_v56  ;;  %v2281_v56 = vor.u32 %v3148_v46, %v2278_v47  ;;  %v2081_v63 = vor.u32 %v3098_v49, %v2078_v50  ;;  %v2430_v46 = vld [vmem:[#allocation2 + $0x2c8] sm:$0xf0]  ;;  %v3202_v47 = vld [vmem:[#allocation2 + $0x344] sm:$0xf] }
  0x58   :  { %973 = vmatpush.bf16.msra.mxu1 %v2185_v57  ;;  %v2206_v57 = vld [vmem:[#allocation2 + $0x108] sm:$0xf0]  ;;  %v3218_v49 = vld [vmem:[#allocation2 + $0x3c4] sm:$0xf] }
  0x59   :  { %986 = vmatpush.bf16.msra.mxu2 %v2249_v58  ;;  %v3146_v58 = vld [vmem:[#allocation2 + $0x184] sm:$0xf] }
  0x5a   :  { %999 = vmatpush.bf16.msra.mxu3 %v2313_v62  ;;  %v3192_v62 = vld [vmem:[#allocation2 + $0x2f4] sm:$0xf]  ;;  %v2273_v9 = vor.u32 %v3146_v58, %v2270_v59  ;;  %v2550_v59 = vld [vmem:[#allocation2 + $0x3b8] sm:$0xf0] }
  0x5b   :  { %961 = vmatpush.bf16.msra.mxu0 %v2113_v5  ;;  %v2209_v5 = vor.u32 %v3130_v55, %v2206_v57  ;;  %v2457_v11 = vor.u32 %v3192_v62, %v2454_v0  ;;  %v2422_v55 = vld [vmem:[#allocation2 + $0x2b8] sm:$0xf0]  ;;  %v3216_v58 = vld [vmem:[#allocation2 + $0x3b4] sm:$0xf]  ;;  %v2350_v0 = vld [vmem:[#allocation2 + $0x228] sm:$0xf0] }
  0x5c   :  { %974 = vmatpush.bf16.msra.mxu1 %v2177_v7  ;;  %v3224_v7 = vld [vmem:[#allocation2 + $0x3f4] sm:$0xf]  ;;  %v2486_v57 = vld [vmem:[#allocation2 + $0x338] sm:$0xf0]  ;;  %v2425_v61 = vor.u32 %v3184_v53, %v2422_v55  ;;  %v3270_v53 = vld [vmem:[#allocation4 + $0x15c] sm:$0xf0] }
  0x5d   :  { %987 = vmatpush.bf16.msra.mxu2 %v2241_v8  ;;  %v2582_v8 = vld [vmem:[#allocation2 + $0x3f8] sm:$0xf0]  ;;  %v2750_v55 = vld [vmem:[#allocation4 + $0x160] sm:$0xf0] }
  0x5e   :  { %1000 = vmatpush.bf16.msra.mxu3 %v2305_v12  ;;  %v2521_v12 = vor.u32 %v3208_v2, %v2518_v3  ;;  %v2585_v18 = vor.u32 %v3224_v7, %v2582_v8  ;;  %v3182_v2 = vld [vmem:[#allocation2 + $0x2a4] sm:$0xf]  ;;  %v2553_v3 = vor.u32 %v3216_v58, %v2550_v59  ;;  %v2478_v7 = vld [vmem:[#allocation2 + $0x328] sm:$0xf0]  ;;  %v2716_v58 = vld [vmem:[#allocation4 + $0x100] sm:$0xf] }
  0x5f   :  { %962 = vmatpush.bf16.msra.mxu0 %v2105_v20  ;;  %v3206_v20 = vld [vmem:[#allocation2 + $0x364] sm:$0xf]  ;;  %v3262_v59 = vld [vmem:[#allocation4 + $0x11c] sm:$0xf0] }
  0x60   :  { %975 = vmatpush.bf16.msra.mxu1 %v2169_v21  ;;  %v2510_v21 = vld [vmem:[#allocation2 + $0x368] sm:$0xf0]  ;;  %v3214_v8 = vld [vmem:[#allocation2 + $0x3a4] sm:$0xf] }
  0x61   :  { %988 = vmatpush.bf16.msra.mxu2 %v2233_v22  ;;  %v3222_v22 = vld [vmem:[#allocation2 + $0x3e4] sm:$0xf] }
  0x62   :  { %1001 = vmatpush.bf16.msra.mxu3 %v2297_v26  ;;  %v2513_v26 = vor.u32 %v3206_v20, %v2510_v21  ;;  %v2577_v30 = vor.u32 %v3222_v22, %v2574_v23  ;;  %v3196_v20 = vld [vmem:[#allocation2 + $0x314] sm:$0xf]  ;;  %v2470_v21 = vld [vmem:[#allocation2 + $0x318] sm:$0xf0] }
  0x63   :  { %963 = vmatpush.bf16.msra.mxu0 %v2097_v32  ;;  %v3204_v32 = vld [vmem:[#allocation2 + $0x354] sm:$0xf]  ;;  %v2534_v23 = vld [vmem:[#allocation2 + $0x398] sm:$0xf0]  ;;  %v2473_v27 = vor.u32 %v3196_v20, %v2470_v21  ;;  %v3226_v20 = vld [vmem:[#allocation4 + $0x4] sm:$0xf] }
  0x64   :  { %976 = vmatpush.bf16.msra.mxu1 %v2161_v33  ;;  %v2502_v33 = vld [vmem:[#allocation2 + $0x358] sm:$0xf0]  ;;  %v3212_v22 = vld [vmem:[#allocation2 + $0x394] sm:$0xf]  ;;  %v2590_v21 = vld [vmem:[#allocation4 + $0x20] sm:$0xf0] }
  0x65   :  { %989 = vmatpush.bf16.msra.mxu2 %v2225_v34  ;;  %v3220_v34 = vld [vmem:[#allocation2 + $0x3d4] sm:$0xf]  ;;  %v2537_v31 = vor.u32 %v3212_v22, %v2534_v23  ;;  %v2820_v22 = vld [vmem:[#allocation4 + $0x1c8] sm:$0xf] }
  0x66   :  { %1002 = vmatpush.bf16.msra.mxu3 %v2289_v41  ;;  %v2505_v41 = vor.u32 %v3204_v32, %v2502_v33  ;;  %v2569_v45 = vor.u32 %v3220_v34, %v2566_v36  ;;  %v3194_v32 = vld [vmem:[#allocation2 + $0x304] sm:$0xf]  ;;  %v2462_v33 = vld [vmem:[#allocation2 + $0x308] sm:$0xf0]  ;;  %v3287_v23 = vld [vmem:[#allocation4 + $0x1e4] sm:$0xf0] }
  0x67   :  { %964 = vmatpush.bf16.msra.mxu0 %v2089_v48  ;;  %v2494_v48 = vld [vmem:[#allocation2 + $0x348] sm:$0xf0]  ;;  %v3210_v34 = vld [vmem:[#allocation2 + $0x384] sm:$0xf] }
  0x68   :  { %977 = vmatpush.bf16.msra.mxu1 %v2153_v51  ;;  %v3168_v51 = vld [vmem:[#allocation2 + $0x234] sm:$0xf]  ;;  %v2526_v36 = vld [vmem:[#allocation2 + $0x388] sm:$0xf0] }
  0x69   :  { %990 = vmatpush.bf16.msra.mxu2 %v2217_v52  ;;  %v2358_v52 = vld [vmem:[#allocation2 + $0x238] sm:$0xf0] }
  0x6a   :  { %1003 = vmatpush.bf16.msra.mxu3 %v2281_v56  ;;  %v3200_v56 = vld [vmem:[#allocation2 + $0x334] sm:$0xf]  ;;  %v2361_v60 = vor.u32 %v3168_v51, %v2358_v52  ;;  %v2748_v52 = vld [vmem:[#allocation4 + $0x140] sm:$0xf] }
  0x6b   :  { %965 = vmatpush.bf16.msra.mxu0 %v2081_v63  ;;  %v2489_v62 = vor.u32 %v3200_v56, %v2486_v57  ;;  %v3166_v63 = vld [vmem:[#allocation2 + $0x224] sm:$0xf]  ;;  %v2749_v56 = vor.u32 %v3270_v53, %v2748_v52 }
  0x6c   :  { %978 = vmatpush.bf16.msra.mxu1 %v2145_v4  ;;  %v2414_v4 = vld [vmem:[#allocation2 + $0x2a8] sm:$0xf0] }
  0x6d   :  { %991 = vmatpush.bf16.msra.mxu2 %v2209_v5  ;;  %v3198_v5 = vld [vmem:[#allocation2 + $0x324] sm:$0xf] }
  0x6e   :  { %1004 = vmatpush.bf16.msra.mxu3 %v2273_v9  ;;  %966 = vmatmul.bf16.vlgmr.msra.gmra.mxu0 %v3469_v14  ;;  %v2558_v14 = vld [vmem:[#allocation2 + $0x3c8] sm:$0xf0] }
  0x6f   :  { %1010 = vmatpush.bf16.msrb.mxu0 %v2393_v10  ;;  %979 = vmatmul.bf16.vlgmr.msra.gmra.mxu1 %v3471_v15  ;;  %v2497_v15 = vor.u32 %v3202_v47, %v2494_v48  ;;  %v2561_v54 = vor.u32 %v3218_v49, %v2558_v14  ;;  %v2542_v9 = vld [vmem:[#allocation2 + $0x3a8] sm:$0xf0]  ;;  %v2353_v10 = vor.u32 %v3166_v63, %v2350_v0  ;;  %v2780_v49 = vld [vmem:[#allocation4 + $0x180] sm:$0xf]  ;;  %v3250_v0 = vld [vmem:[#allocation4 + $0xc4] sm:$0xf] }
  0x70   :  { %1023 = vmatpush.bf16.msrb.mxu1 %v2457_v11  ;;  %992 = vmatmul.bf16.vlgmr.msra.gmra.mxu2 %v3461_v1  ;;  %v3186_v1 = vld [vmem:[#allocation2 + $0x2c4] sm:$0xf]  ;;  %v2417_v11 = vor.u32 %v3182_v2, %v2414_v4  ;;  %v3278_v14 = vld [vmem:[#allocation4 + $0x19c] sm:$0xf0] }
  0x71   :  { %1036 = vmatpush.bf16.msrb.mxu2 %v2521_v12  ;;  %1005 = vmatmul.bf16.vlgmr.msra.gmra.mxu3 %v3466_v6  ;;  %v2369_v6 = vor.u32 %v3170_v42, %v2366_v43  ;;  %v2433_v50 = vor.u32 %v3186_v1, %v2430_v46  ;;  %v2481_v12 = vor.u32 %v3198_v5, %v2478_v7  ;;  %v3282_v42 = vld [vmem:[#allocation4 + $0x1c4] sm:$0xf]  ;;  %v2684_v63 = vld [vmem:[#allocation4 + $0xc0] sm:$0xf] }
  0x72   :  { %1049 = vmatpush.bf16.msrb.mxu3 %v2585_v18  ;;  %v2545_v18 = vor.u32 %v3214_v8, %v2542_v9  ;;  %v2814_v43 = vld [vmem:[#allocation4 + $0x1e0] sm:$0xf0]  ;;  %v2529_v46 = vor.u32 %v3210_v34, %v2526_v36  ;;  %v3246_v4 = vld [vmem:[#allocation4 + $0x9c] sm:$0xf0] }
  0x73   :  { %1011 = vmatpush.bf16.msrb.mxu0 %v2385_v24  ;;  %v2345_v24 = vor.u32 %v3164_v13, %v2342_v16  ;;  %v2817_v48 = vor.u32 %v3282_v42, %v2814_v43  ;;  %v3242_v5 = vld [vmem:[#allocation4 + $0x84] sm:$0xf]  ;;  %v2758_v42 = vld [vmem:[#allocation4 + $0x168] sm:$0xf0] }
  0x74   :  { %1024 = vmatpush.bf16.msrb.mxu1 %v2449_v25  ;;  %v3162_v25 = vld [vmem:[#allocation2 + $0x204] sm:$0xf] }
  0x75   :  { %1037 = vmatpush.bf16.msrb.mxu2 %v2513_v26  ;;  %v2409_v26 = vor.u32 %v3180_v17, %v2406_v19  ;;  %v2654_v7 = vld [vmem:[#allocation4 + $0xa0] sm:$0xf0]  ;;  %v3230_v19 = vld [vmem:[#allocation4 + $0x1c] sm:$0xf0] }
  0x76   :  { %1050 = vmatpush.bf16.msrb.mxu3 %v2577_v30  ;;  %v2398_v30 = vld [vmem:[#allocation2 + $0x288] sm:$0xf0]  ;;  %v2657_v9 = vor.u32 %v3242_v5, %v2654_v7  ;;  %v2622_v13 = vld [vmem:[#allocation4 + $0x60] sm:$0xf0] }
  0x77   :  { %1012 = vmatpush.bf16.msrb.mxu0 %v2377_v37  ;;  %v2812_v37 = vld [vmem:[#allocation4 + $0x1c0] sm:$0xf]  ;;  %v2401_v1 = vor.u32 %v3178_v29, %v2398_v30  ;;  %v2788_v30 = vld [vmem:[#allocation4 + $0x188] sm:$0xf] }
  0x78   :  { %1025 = vmatpush.bf16.msrb.mxu1 %v2441_v38  ;;  %v3286_v38 = vld [vmem:[#allocation4 + $0x1dc] sm:$0xf0] }
  0x79   :  { %1038 = vmatpush.bf16.msrb.mxu2 %v2505_v41  ;;  %v2337_v41 = vor.u32 %v3162_v25, %v2334_v28  ;;  %v2813_v47 = vor.u32 %v3286_v38, %v2812_v37  ;;  %v2822_v25 = vld [vmem:[#allocation4 + $0x1e8] sm:$0xf0]  ;;  %v2821_v28 = vor.u32 %v3287_v23, %v2820_v22  ;;  %v2756_v37 = vld [vmem:[#allocation4 + $0x148] sm:$0xf]  ;;  %v3070_v22 = vld [vmem:[#allocation4 + $0x3e0] sm:$0xf0] }
  0x7a   :  { %1051 = vmatpush.bf16.msrb.mxu3 %v2569_v45  ;;  %v2465_v45 = vor.u32 %v3194_v32, %v2462_v33  ;;  %v3275_v32 = vld [vmem:[#allocation4 + $0x18c] sm:$0xf]  ;;  %v3271_v38 = vld [vmem:[#allocation4 + $0x164] sm:$0xf0] }
  0x7b   :  { %1013 = vmatpush.bf16.msrb.mxu0 %v2369_v6  ;;  %v3274_v6 = vld [vmem:[#allocation4 + $0x184] sm:$0xf]  ;;  %v2790_v33 = vld [vmem:[#allocation4 + $0x1a8] sm:$0xf0]  ;;  %v2757_v43 = vor.u32 %v3271_v38, %v2756_v37 }
  0x7c   :  { %1026 = vmatpush.bf16.msrb.mxu1 %v2433_v50  ;;  %v2782_v50 = vld [vmem:[#allocation4 + $0x1a0] sm:$0xf0]  ;;  %v2793_v36 = vor.u32 %v3275_v32, %v2790_v33  ;;  %v3334_v32 = vld [vmem:[#allocation4 + $0x35c] sm:$0xf0] }
  0x7d   :  { %1039 = vmatpush.bf16.msrb.mxu2 %v2497_v15  ;;  %v2781_v15 = vor.u32 %v3278_v14, %v2780_v49  ;;  %v2785_v51 = vor.u32 %v3274_v6, %v2782_v50  ;;  %v2726_v49 = vld [vmem:[#allocation4 + $0x128] sm:$0xf0]  ;;  %v2692_v50 = vld [vmem:[#allocation4 + $0xc8] sm:$0xf] }
  0x7e   :  { %1052 = vmatpush.bf16.msrb.mxu3 %v2561_v54  ;;  %v3266_v54 = vld [vmem:[#allocation4 + $0x144] sm:$0xf] }
  0x7f   :  { %1014 = vmatpush.bf16.msrb.mxu0 %v2361_v60  ;;  %v2753_v57 = vor.u32 %v3266_v54, %v2750_v55  ;;  %v3258_v60 = vld [vmem:[#allocation4 + $0x104] sm:$0xf]  ;;  %v2694_v54 = vld [vmem:[#allocation4 + $0xe8] sm:$0xf0] }
  0x80   :  { %1027 = vmatpush.bf16.msrb.mxu1 %v2425_v61  ;;  %v2717_v61 = vor.u32 %v3262_v59, %v2716_v58  ;;  %v3247_v58 = vld [vmem:[#allocation4 + $0xa4] sm:$0xf0]  ;;  %v3243_v59 = vld [vmem:[#allocation4 + $0x8c] sm:$0xf] }
  0x81   :  { %1040 = vmatpush.bf16.msrb.mxu2 %v2489_v62 }
  0x82   :  { %1053 = vmatpush.bf16.msrb.mxu3 %v2553_v3  ;;  %v2652_v3 = vld [vmem:[#allocation4 + $0x80] sm:$0xf] }
  0x83   :  { %1015 = vmatpush.bf16.msrb.mxu0 %v2353_v10  ;;  %v2653_v8 = vor.u32 %v3246_v4, %v2652_v3  ;;  %v2620_v10 = vld [vmem:[#allocation4 + $0x40] sm:$0xf]  ;;  %v2630_v4 = vld [vmem:[#allocation4 + $0x68] sm:$0xf0] }
  0x84   :  { %1028 = vmatpush.bf16.msrb.mxu1 %v2417_v11  ;;  %v3238_v11 = vld [vmem:[#allocation4 + $0x5c] sm:$0xf0] }
  0x85   :  { %1041 = vmatpush.bf16.msrb.mxu2 %v2481_v12  ;;  %v3234_v12 = vld [vmem:[#allocation4 + $0x44] sm:$0xf]  ;;  %v2621_v16 = vor.u32 %v3238_v11, %v2620_v10  ;;  %v3231_v10 = vld [vmem:[#allocation4 + $0x24] sm:$0xf0]  ;;  %v3227_v11 = vld [vmem:[#allocation4 + $0xc] sm:$0xf] }
  0x86   :  { %1054 = vmatpush.bf16.msrb.mxu3 %v2545_v18  ;;  %v2625_v17 = vor.u32 %v3234_v12, %v2622_v13  ;;  %v2588_v18 = vld [vmem:[#allocation4] sm:$0xf]  ;;  %v2598_v13 = vld [vmem:[#allocation4 + $0x28] sm:$0xf0] }
  0x87   :  { %1016 = vmatpush.bf16.msrb.mxu0 %v2345_v24  ;;  %v3283_v24 = vld [vmem:[#allocation4 + $0x1cc] sm:$0xf] }
  0x88   :  { %1029 = vmatpush.bf16.msrb.mxu1 %v2409_v26  ;;  %v2589_v26 = vor.u32 %v3230_v19, %v2588_v18  ;;  %v2825_v29 = vor.u32 %v3283_v24, %v2822_v25  ;;  %v3350_v18 = vld [vmem:[#allocation4 + $0x3dc] sm:$0xf0]  ;;  %v3346_v19 = vld [vmem:[#allocation4 + $0x3c4] sm:$0xf] }
  0x89   :  { %1042 = vmatpush.bf16.msrb.mxu2 %v2473_v27  ;;  %v2593_v27 = vor.u32 %v3226_v20, %v2590_v21  ;;  %v3073_v24 = vor.u32 %v3346_v19, %v3070_v22  ;;  %v3036_v25 = vld [vmem:[#allocation4 + $0x380] sm:$0xf]  ;;  %v2846_v19 = vld [vmem:[#allocation4 + $0x220] sm:$0xf0] }
  0x8a   :  { %1055 = vmatpush.bf16.msrb.mxu3 %v2537_v31  ;;  %v3279_v31 = vld [vmem:[#allocation4 + $0x1a4] sm:$0xf0] }
  0x8b   :  { %1017 = vmatpush.bf16.msrb.mxu0 %v2337_v41  ;;  %v2789_v34 = vor.u32 %v3279_v31, %v2788_v30  ;;  %v3267_v41 = vld [vmem:[#allocation4 + $0x14c] sm:$0xf]  ;;  %v3004_v31 = vld [vmem:[#allocation4 + $0x340] sm:$0xf] }
  0x8c   :  { %1030 = vmatpush.bf16.msrb.mxu1 %v2401_v1  ;;  %v2761_v1 = vor.u32 %v3267_v41, %v2758_v42  ;;  %v3005_v37 = vor.u32 %v3334_v32, %v3004_v31  ;;  %v2972_v41 = vld [vmem:[#allocation4 + $0x300] sm:$0xf] }
  0x8d   :  { %1043 = vmatpush.bf16.msrb.mxu2 %v2465_v45  ;;  %v2724_v45 = vld [vmem:[#allocation4 + $0x108] sm:$0xf]  ;;  %v3326_v42 = vld [vmem:[#allocation4 + $0x31c] sm:$0xf0] }
  0x8e   :  { %1056 = vmatpush.bf16.msrb.mxu3 %v2529_v46  ;;  %1018 = vmatmul.bf16.vlgmr.msrb.gmra.mxu0 %v3484_v39  ;;  %v2718_v39 = vld [vmem:[#allocation4 + $0x120] sm:$0xf0]  ;;  %v3263_v46 = vld [vmem:[#allocation4 + $0x124] sm:$0xf0] }
  0x8f   :  { %1852 = vmatpush.bf16.msra.mxu0 %v2813_v47  ;;  %1031 = vmatmul.bf16.vlgmr.msrb.gmra.mxu1 %v3488_v44  ;;  %v2721_v62 = vor.u32 %v3258_v60, %v2718_v39  ;;  %v3254_v44 = vld [vmem:[#allocation4 + $0xdc] sm:$0xf0]  ;;  %v3259_v47 = vld [vmem:[#allocation4 + $0x10c] sm:$0xf] }
  0x90   :  { %1044 = vmatmul.bf16.vlgmr.msrb.gmra.mxu2 %v3482_v35  ;;  %v2686_v35 = vld [vmem:[#allocation4 + $0xe0] sm:$0xf0]  ;;  %v2685_v2 = vor.u32 %v3254_v44, %v2684_v63  ;;  %v2729_v14 = vor.u32 %v3259_v47, %v2726_v49  ;;  %v2662_v39 = vld [vmem:[#allocation4 + $0xa8] sm:$0xf0]  ;;  %v2940_v49 = vld [vmem:[#allocation4 + $0x2c0] sm:$0xf] }
  0x91   :  { %1878 = vmatpush.bf16.msra.mxu2 %v2817_v48  ;;  %1057 = vmatmul.bf16.vlgmr.msrb.gmra.mxu3 %v3486_v40  ;;  %v2689_v40 = vor.u32 %v3250_v0, %v2686_v35  ;;  %v2725_v48 = vor.u32 %v3263_v46, %v2724_v45  ;;  %v184_v63 = vld [vmem:[%s3568_s1] sm:$0xff]  ;;  %v2628_v0 = vld [vmem:[#allocation4 + $0x48] sm:$0xf]  ;;  %v2973_v46 = vor.u32 %v3326_v42, %v2972_v41 }
  0x92   :  { %v3239_v35 = vld [vmem:[#allocation4 + $0x64] sm:$0xf0]  ;;  %1891 = vmatpush.bf16.msra.mxu3 %v3073_v24  ;;  %v2974_v45 = vld [vmem:[#allocation4 + $0x320] sm:$0xf0] }
  0x93   :  { %1853 = vmatpush.bf16.msra.mxu0 %v2781_v15  ;;  %v3255_v15 = vld [vmem:[#allocation4 + $0xe4] sm:$0xf0]  ;;  %v2629_v3 = vor.u32 %v3239_v35, %v2628_v0  ;;  %v2876_v0 = vld [vmem:[#allocation4 + $0x240] sm:$0xf] }
  0x94   :  { %v2693_v53 = vor.u32 %v3255_v15, %v2692_v50  ;;  %v3314_v15 = vld [vmem:[#allocation4 + $0x2c4] sm:$0xf]  ;;  %v3302_v35 = vld [vmem:[#allocation4 + $0x25c] sm:$0xf0] }
  0x95   :  { %1879 = vmatpush.bf16.msra.mxu2 %v2785_v51  ;;  %v3251_v51 = vld [vmem:[#allocation4 + $0xcc] sm:$0xf] }
  0x96   :  { %v2697_v55 = vor.u32 %v3251_v51, %v2694_v54  ;;  %v2942_v51 = vld [vmem:[#allocation4 + $0x2e0] sm:$0xf0] }
  0x97   :  { %1854 = vmatpush.bf16.msra.mxu0 %v2749_v56  ;;  %v2945_v54 = vor.u32 %v3314_v15, %v2942_v51  ;;  %v3014_v15 = vld [vmem:[#allocation4 + $0x368] sm:$0xf0] }
  0x99   :  { %1880 = vmatpush.bf16.msra.mxu2 %v2753_v57  ;;  %v2660_v57 = vld [vmem:[#allocation4 + $0x88] sm:$0xf] }
  0x9a   :  { %v2661_v60 = vor.u32 %v3247_v58, %v2660_v57  ;;  %v3306_v58 = vld [vmem:[#allocation4 + $0x284] sm:$0xf] }
  0x9b   :  { %1855 = vmatpush.bf16.msra.mxu0 %v2717_v61 }
  0x9d   :  { %1881 = vmatpush.bf16.msra.mxu2 %v2721_v62  ;;  %v2665_v62 = vor.u32 %v3243_v59, %v2662_v39  ;;  %v2910_v59 = vld [vmem:[#allocation4 + $0x2a0] sm:$0xf0] }
  0x9f   :  { %1856 = vmatpush.bf16.msra.mxu0 %v2685_v2  ;;  %v3235_v2 = vld [vmem:[#allocation4 + $0x4c] sm:$0xf] }
  0xa0   :  { %v2633_v5 = vor.u32 %v3235_v2, %v2630_v4  ;;  %v3298_v2 = vld [vmem:[#allocation4 + $0x244] sm:$0xf]  ;;  %v2877_v4 = vor.u32 %v3302_v35, %v2876_v0  ;;  %v3252_v0 = vld [vmem:[#allocation4 + $0xd4] sm:$0xf] }
  0xa1   :  { %1882 = vmatpush.bf16.msra.mxu2 %v2689_v40  ;;  %v2702_v35 = vld [vmem:[#allocation4 + $0xf0] sm:$0xf0] }
  0xa3   :  { %1857 = vmatpush.bf16.msra.mxu0 %v2653_v8 }
  0xa5   :  { %1883 = vmatpush.bf16.msra.mxu2 %v2657_v9  ;;  %v2596_v9 = vld [vmem:[#allocation4 + $0x8] sm:$0xf] }
  0xa6   :  { %v2597_v12 = vor.u32 %v3231_v10, %v2596_v9  ;;  %v3294_v9 = vld [vmem:[#allocation4 + $0x21c] sm:$0xf0]  ;;  %v3288_v10 = vld [vmem:[#allocation4 + $0x1ec] sm:$0xf0] }
  0xa7   :  { %1858 = vmatpush.bf16.msra.mxu0 %v2621_v16  ;;  %v2601_v16 = vor.u32 %v3227_v11, %v2598_v13  ;;  %v3284_v11 = vld [vmem:[#allocation4 + $0x1d4] sm:$0xf] }
  0xa9   :  { %1884 = vmatpush.bf16.msra.mxu2 %v2625_v17  ;;  %v3068_v17 = vld [vmem:[#allocation4 + $0x3c0] sm:$0xf] }
  0xaa   :  { %v3069_v21 = vor.u32 %v3350_v18, %v3068_v17  ;;  %v3290_v18 = vld [vmem:[#allocation4 + $0x204] sm:$0xf] }
  0xab   :  { %1859 = vmatpush.bf16.msra.mxu0 %v2589_v26  ;;  %v863_v6 = vpop.f32.mrf.mxu0  ;;  %v3342_v26 = vld [vmem:[#allocation4 + $0x39c] sm:$0xf0]  ;;  %v2849_v31 = vor.u32 %v3290_v18, %v2846_v19  ;;  %v2950_v19 = vld [vmem:[#allocation4 + $0x2e8] sm:$0xf0] }
  0xac   :  { %v876_v52 = vpop.f32.mrf.mxu1  ;;  %v864_v7 = vadd.f32 %v863_v6, %v184_v63  ;;  %1865 = vmatpush.bf16.msra.mxu1 %v3069_v21  ;;  %v3280_v21 = vld [vmem:[#allocation4 + $0x1ac] sm:$0xf0] }
  0xad   :  { %1885 = vmatpush.bf16.msra.mxu2 %v2593_v27  ;;  %v3338_v27 = vld [vmem:[#allocation4 + $0x384] sm:$0xf] }
  0xae   :  { %v877_v23 = vadd.f32 %v876_v52, %v864_v7  ;;  %v2828_v7 = vld [vmem:[#allocation4 + $0x1d0] sm:$0xf] }
  0xaf   :  { %1904 = vmatpush.bf16.msrb.mxu0 %v2821_v28  ;;  %v3038_v28 = vld [vmem:[#allocation4 + $0x3a0] sm:$0xf0] }
  0xb0   :  { %v3041_v30 = vor.u32 %v3338_v27, %v3038_v28  ;;  %v3347_v27 = vld [vmem:[#allocation4 + $0x3cc] sm:$0xf] }
  0xb1   :  { %1930 = vmatpush.bf16.msrb.mxu2 %v2825_v29  ;;  %v3037_v29 = vor.u32 %v3342_v26, %v3036_v25  ;;  %v3076_v25 = vld [vmem:[#allocation4 + $0x3c8] sm:$0xf] }
  0xb2   :  { %1892 = vmatpush.bf16.msra.mxu3 %v3041_v30  ;;  %v3351_v26 = vld [vmem:[#allocation4 + $0x3e4] sm:$0xf0]  ;;  %v2798_v30 = vld [vmem:[#allocation4 + $0x1b0] sm:$0xf0] }
  0xb3   :  { %1905 = vmatpush.bf16.msrb.mxu0 %v2789_v34  ;;  %v889_v56 = vpop.f32.mrf.mxu2  ;;  %v865_v44 = vpop.f32.mrf.mxu0  ;;  %v3330_v34 = vld [vmem:[#allocation4 + $0x344] sm:$0xf]  ;;  %1866 = vmatpush.bf16.msra.mxu1 %v3037_v29  ;;  %v3276_v29 = vld [vmem:[#allocation4 + $0x194] sm:$0xf]  ;;  %v3077_v32 = vor.u32 %v3351_v26, %v3076_v25 }
  0xb4   :  { %v902_v61 = vpop.f32.mrf.mxu3  ;;  %v878_v40 = vpop.f32.mrf.mxu1  ;;  %v890_v33 = vadd.f32 %v889_v56, %v877_v23  ;;  %v3310_v56 = vld [vmem:[#allocation4 + $0x29c] sm:$0xf0]  ;;  %v2829_v23 = vor.u32 %v3288_v10, %v2828_v7  ;;  %v2801_v42 = vor.u32 %v3276_v29, %v2798_v30  ;;  %v2668_v7 = vld [vmem:[#allocation4 + $0x90] sm:$0xf]  ;;  %v2705_v10 = vor.u32 %v3252_v0, %v2702_v35  ;;  %v3311_v29 = vld [vmem:[#allocation4 + $0x2a4] sm:$0xf0] }
  0xb5   :  { %1931 = vmatpush.bf16.msrb.mxu2 %v2793_v36  ;;  %v3006_v36 = vld [vmem:[#allocation4 + $0x360] sm:$0xf0]  ;;  %v3307_v30 = vld [vmem:[#allocation4 + $0x28c] sm:$0xf]  ;;  %v3281_v35 = vld [vmem:[#allocation4 + $0x1b4] sm:$0xf0] }
  0xb6   :  { %v3009_v38 = vor.u32 %v3330_v34, %v3006_v36  ;;  %v3044_v36 = vld [vmem:[#allocation4 + $0x388] sm:$0xf] }
  0xb7   :  { %1906 = vmatpush.bf16.msrb.mxu0 %v2757_v43  ;;  %v3322_v43 = vld [vmem:[#allocation4 + $0x304] sm:$0xf]  ;;  %1867 = vmatpush.bf16.msra.mxu1 %v3005_v37  ;;  %v3343_v37 = vld [vmem:[#allocation4 + $0x3a4] sm:$0xf0] }
  0xb8   :  { %1893 = vmatpush.bf16.msra.mxu3 %v3009_v38  ;;  %v2977_v47 = vor.u32 %v3322_v43, %v2974_v45  ;;  %v3339_v38 = vld [vmem:[#allocation4 + $0x38c] sm:$0xf]  ;;  %v2764_v43 = vld [vmem:[#allocation4 + $0x150] sm:$0xf] }
  0xb9   :  { %1932 = vmatpush.bf16.msrb.mxu2 %v2761_v1  ;;  %v903_v1 = vadd.f32 %v902_v61, %v890_v33  ;;  %v3078_v33 = vld [vmem:[#allocation4 + $0x3e8] sm:$0xf0]  ;;  %v3272_v45 = vld [vmem:[#allocation4 + $0x16c] sm:$0xf0] }
  0xba   :  { %v3081_v34 = vor.u32 %v3347_v27, %v3078_v33  ;;  %v2765_v51 = vor.u32 %v3272_v45, %v2764_v43  ;;  %v2916_v27 = vld [vmem:[#allocation4 + $0x288] sm:$0xf]  ;;  %v3228_v43 = vld [vmem:[#allocation4 + $0x14] sm:$0xf] }
  0xbb   :  { %1907 = vmatpush.bf16.msrb.mxu0 %v2725_v48  ;;  %v891_v8 = vpop.f32.mrf.mxu2  ;;  %1868 = vmatpush.bf16.msra.mxu1 %v2973_v46  ;;  %v3268_v46 = vld [vmem:[#allocation4 + $0x154] sm:$0xf]  ;;  %v2917_v33 = vor.u32 %v3311_v29, %v2916_v27 }
  0xbc   :  { %v904_v20 = vpop.f32.mrf.mxu3  ;;  %1894 = vmatpush.bf16.msra.mxu3 %v2977_v47  ;;  %v2844_v8 = vld [vmem:[#allocation4 + $0x200] sm:$0xf]  ;;  %v2766_v47 = vld [vmem:[#allocation4 + $0x170] sm:$0xf0] }
  0xbd   :  { %1933 = vmatpush.bf16.msrb.mxu2 %v2729_v14  ;;  %v3318_v14 = vld [vmem:[#allocation4 + $0x2dc] sm:$0xf0]  ;;  %v2845_v17 = vor.u32 %v3294_v9, %v2844_v8  ;;  %v2796_v20 = vld [vmem:[#allocation4 + $0x190] sm:$0xf] }
  0xbe   :  { %v2941_v52 = vor.u32 %v3318_v14, %v2940_v49  ;;  %v2797_v41 = vor.u32 %v3280_v21, %v2796_v20  ;;  %v3012_v14 = vld [vmem:[#allocation4 + $0x348] sm:$0xf]  ;;  %v3248_v8 = vld [vmem:[#allocation4 + $0xac] sm:$0xf0] }
  0xbf   :  { %1908 = vmatpush.bf16.msrb.mxu0 %v2693_v53 }
  0xc0   :  { %1869 = vmatpush.bf16.msra.mxu1 %v2941_v52  ;;  %1895 = vmatpush.bf16.msra.mxu3 %v2945_v54  ;;  %v2769_v52 = vor.u32 %v3268_v46, %v2766_v47  ;;  %v3264_v54 = vld [vmem:[#allocation4 + $0x12c] sm:$0xf0]  ;;  %v2884_v46 = vld [vmem:[#allocation4 + $0x248] sm:$0xf] }
  0xc1   :  { %1934 = vmatpush.bf16.msrb.mxu2 %v2697_v55  ;;  %v2908_v55 = vld [vmem:[#allocation4 + $0x280] sm:$0xf]  ;;  %v3303_v47 = vld [vmem:[#allocation4 + $0x264] sm:$0xf0] }
  0xc2   :  { %v2909_v61 = vor.u32 %v3310_v56, %v2908_v55  ;;  %v3260_v55 = vld [vmem:[#allocation4 + $0x114] sm:$0xf] }
  0xc3   :  { %1909 = vmatpush.bf16.msrb.mxu0 %v2661_v60  ;;  %v2734_v56 = vld [vmem:[#allocation4 + $0x130] sm:$0xf0] }
  0xc4   :  { %1870 = vmatpush.bf16.msra.mxu1 %v2909_v61  ;;  %v2737_v61 = vor.u32 %v3260_v55, %v2734_v56 }
  0xc5   :  { %1935 = vmatpush.bf16.msrb.mxu2 %v2665_v62  ;;  %v2913_v62 = vor.u32 %v3306_v58, %v2910_v59  ;;  %v2700_v59 = vld [vmem:[#allocation4 + $0xd0] sm:$0xf] }
  0xc7   :  { %1910 = vmatpush.bf16.msrb.mxu0 %v2629_v3  ;;  %v2878_v3 = vld [vmem:[#allocation4 + $0x260] sm:$0xf0]  ;;  %1896 = vmatpush.bf16.msra.mxu3 %v2913_v62  ;;  %v2980_v62 = vld [vmem:[#allocation4 + $0x308] sm:$0xf] }
  0xc8   :  { %1871 = vmatpush.bf16.msra.mxu1 %v2877_v4 }
  0xc9   :  { %1936 = vmatpush.bf16.msrb.mxu2 %v2633_v5  ;;  %v2881_v5 = vor.u32 %v3298_v2, %v2878_v3 }
  0xcb   :  { %1911 = vmatpush.bf16.msrb.mxu0 %v2597_v12  ;;  %v915_v48 = vpop.f32.mrf.mxu0  ;;  %v2830_v12 = vld [vmem:[#allocation4 + $0x1f0] sm:$0xf0]  ;;  %1897 = vmatpush.bf16.msra.mxu3 %v2881_v5 }
  0xcc   :  { %v916_v6 = vadd.f32 %v915_v48, %v903_v1  ;;  %v928_v50 = vpop.f32.mrf.mxu1  ;;  %v2833_v24 = vor.u32 %v3284_v11, %v2830_v12  ;;  %1872 = vmatpush.bf16.msra.mxu1 %v2845_v17  ;;  %v3046_v1 = vld [vmem:[#allocation4 + $0x3a8] sm:$0xf0]  ;;  %v3045_v48 = vor.u32 %v3343_v37, %v3044_v36  ;;  %v2948_v11 = vld [vmem:[#allocation4 + $0x2c8] sm:$0xf]  ;;  %v2670_v17 = vld [vmem:[#allocation4 + $0xb0] sm:$0xf0] }
  0xcd   :  { %1937 = vmatpush.bf16.msrb.mxu2 %v2601_v16  ;;  %v3049_v49 = vor.u32 %v3339_v38, %v3046_v1  ;;  %v3319_v12 = vld [vmem:[#allocation4 + $0x2e4] sm:$0xf0] }
  0xce   :  { %v929_v53 = vadd.f32 %v928_v50, %v916_v6  ;;  %v3335_v6 = vld [vmem:[#allocation4 + $0x364] sm:$0xf0]  ;;  %v3331_v50 = vld [vmem:[#allocation4 + $0x34c] sm:$0xf]  ;;  %v2949_v18 = vor.u32 %v3319_v12, %v2948_v11  ;;  %v3273_v12 = vld [vmem:[#allocation4 + $0x174] sm:$0xf0] }
  0xcf   :  { %1898 = vmatpush.bf16.msra.mxu3 %v2849_v31  ;;  %v3017_v58 = vor.u32 %v3331_v50, %v3014_v15  ;;  %v3236_v31 = vld [vmem:[#allocation4 + $0x54] sm:$0xf]  ;;  %v2886_v50 = vld [vmem:[#allocation4 + $0x268] sm:$0xf0]  ;;  %v3289_v15 = vld [vmem:[#allocation4 + $0x1f4] sm:$0xf0] }
  0xd0   :  { %1917 = vmatpush.bf16.msrb.mxu1 %v3077_v32  ;;  %v2638_v32 = vld [vmem:[#allocation4 + $0x70] sm:$0xf0] }
  0xd1   :  { %v2641_v45 = vor.u32 %v3236_v31, %v2638_v32  ;;  %v3253_v31 = vld [vmem:[#allocation4 + $0xdc] sm:$0xf] }
  0xd2   :  { %v2710_v32 = vld [vmem:[#allocation4 + $0xf8] sm:$0xf0] }
  0xd3   :  { %v941_v57 = vpop.f32.mrf.mxu2  ;;  %v917_v44 = vpop.f32.mrf.mxu0  ;;  %1943 = vmatpush.bf16.msrb.mxu3 %v3081_v34  ;;  %v2918_v34 = vld [vmem:[#allocation4 + $0x2a8] sm:$0xf0] }
  0xd4   :  { %v942_v60 = vadd.f32 %v941_v57, %v929_v53  ;;  %v954_v39 = vpop.f32.mrf.mxu3  ;;  %v930_v40 = vpop.f32.mrf.mxu1  ;;  %v2732_v53 = vld [vmem:[#allocation4 + $0x110] sm:$0xf]  ;;  %1918 = vmatpush.bf16.msrb.mxu1 %v3045_v48  ;;  %v3013_v57 = vor.u32 %v3335_v6, %v3012_v14  ;;  %v3323_v44 = vld [vmem:[#allocation4 + $0x30c] sm:$0xf]  ;;  %v2921_v37 = vor.u32 %v3307_v30, %v2918_v34  ;;  %v2836_v14 = vld [vmem:[#allocation4 + $0x1d8] sm:$0xf]  ;;  %v2885_v6 = vor.u32 %v3303_v47, %v2884_v46 }
  0xd5   :  { %v2982_v40 = vld [vmem:[#allocation4 + $0x328] sm:$0xf0]  ;;  %v3257_v30 = vld [vmem:[#allocation4 + $0xf4] sm:$0xf0] }
  0xd6   :  { %v955_v63 = vadd.f32 %v954_v39, %v942_v60  ;;  %v3256_v60 = vld [vmem:[#allocation4 + $0xec] sm:$0xf0]  ;;  %v2733_v39 = vor.u32 %v3264_v54, %v2732_v53  ;;  %v2985_v4 = vor.u32 %v3323_v44, %v2982_v40  ;;  %v3299_v48 = vld [vmem:[#allocation4 + $0x24c] sm:$0xf]  ;;  %v2806_v40 = vld [vmem:[#allocation4 + $0x1b8] sm:$0xf0] }
  0xd7   :  { %1944 = vmatpush.bf16.msrb.mxu3 %v3049_v49  ;;  %v2701_v9 = vor.u32 %v3256_v60, %v2700_v59  ;;  %v2606_v49 = vld [vmem:[#allocation4 + $0x30] sm:$0xf0]  ;;  %v2889_v53 = vor.u32 %v3299_v48, %v2886_v50  ;;  %v185_v54 = vld [vmem:[%s3568_s1 + $0x8] sm:$0xff]  ;;  %v2644_v46 = vld [vmem:[#allocation4 + $0x58] sm:$0xf] }
  0xd8   :  { %3360 = vtanh.f32 %v955_v63  ;;  %v3327_v63 = vld [vmem:[#allocation4 + $0x324] sm:$0xf0]  ;;  %1919 = vmatpush.bf16.msrb.mxu1 %v3013_v57  ;;  %v2609_v57 = vor.u32 %v3228_v43, %v2606_v49  ;;  %v2854_v44 = vld [vmem:[#allocation4 + $0x228] sm:$0xf0]  ;;  %v2646_v50 = vld [vmem:[#allocation4 + $0x78] sm:$0xf0] }
  0xd9   :  { %v2981_v2 = vor.u32 %v3327_v63, %v2980_v62  ;;  %v2852_v59 = vld [vmem:[#allocation4 + $0x208] sm:$0xf]  ;;  %v2804_v63 = vld [vmem:[#allocation4 + $0x198] sm:$0xf] }
  0xda   :  { %v3295_v60 = vld [vmem:[#allocation4 + $0x224] sm:$0xf0] }
  0xdb   :  { %v943_v13 = vpop.f32.mrf.mxu2  ;;  %1945 = vmatpush.bf16.msrb.mxu3 %v3017_v58 }
  0xdc   :  { %v956_v16 = vpop.f32.mrf.mxu3  ;;  %v3315_v13 = vld [vmem:[#allocation4 + $0x2cc] sm:$0xf]  ;;  %1920 = vmatpush.bf16.msrb.mxu1 %v2981_v2  ;;  %v3277_v2 = vld [vmem:[#allocation4 + $0x19c] sm:$0xf] }
  0xdd   :  { %v3244_v16 = vld [vmem:[#allocation4 + $0x94] sm:$0xf]  ;;  %v2953_v20 = vor.u32 %v3315_v13, %v2950_v19  ;;  %v3269_v13 = vld [vmem:[#allocation4 + $0x15c] sm:$0xf] }
  0xde   :  { %v3361_v22 = vpop.eup %3360  ;;  %v2673_v25 = vor.u32 %v3244_v16, %v2670_v17  ;;  %v2774_v16 = vld [vmem:[#allocation4 + $0x178] sm:$0xf0] }
  0xdf   :  { %v3505_v28 = vpack.c.bf16 %v3361_v22, %v3361_v22  ;;  %1946 = vmatpush.bf16.msrb.mxu3 %v2985_v4  ;;  %v2636_v22 = vld [vmem:[#allocation4 + $0x50] sm:$0xf]  ;;  %v2853_v4 = vor.u32 %v3295_v60, %v2852_v59  ;;  %v2777_v17 = vor.u32 %v3269_v13, %v2774_v16  ;;  %v3332_v16 = vld [vmem:[#allocation4 + $0x354] sm:$0xf] }
  0xe0   :  { %1921 = vmatpush.bf16.msrb.mxu1 %v2949_v18  ;;  %v2740_v18 = vld [vmem:[#allocation4 + $0x118] sm:$0xf]  ;;  %v3336_v13 = vld [vmem:[#allocation4 + $0x36c] sm:$0xf0] }
  0xe1   :  { %1860 = vmatmul.bf16.vlgmr.msra.gmra.mxu0 %v3505_v28  ;;  %1886 = vmatmul.bf16.vlgmr.msra.gmra.mxu2 %v3505_v28 }
  0xe2   :  { %1956 = vmatpush.bf16.msra.mxu0 %v2829_v23  ;;  %1982 = vmatpush.bf16.msra.mxu2 %v2833_v24  ;;  %v3240_v23 = vld [vmem:[#allocation4 + $0x6c] sm:$0xf0]  ;;  %v2669_v24 = vor.u32 %v3248_v8, %v2668_v7  ;;  %v2805_v8 = vor.u32 %v3281_v35, %v2804_v63  ;;  %v3086_v63 = vld [vmem:[#allocation4 + $0x3f0] sm:$0xf0] }
  0xe3   :  { %1947 = vmatpush.bf16.msrb.mxu3 %v2953_v20  ;;  %v2637_v1 = vor.u32 %v3240_v23, %v2636_v22  ;;  %v3265_v20 = vld [vmem:[#allocation4 + $0x134] sm:$0xf0]  ;;  %v3261_v22 = vld [vmem:[#allocation4 + $0x11c] sm:$0xf] }
  0xe4   :  { %1922 = vmatpush.bf16.msrb.mxu1 %v2917_v33  ;;  %v2742_v23 = vld [vmem:[#allocation4 + $0x138] sm:$0xf0] }
  0xe6   :  { %1957 = vmatpush.bf16.msra.mxu0 %v2797_v41  ;;  %1983 = vmatpush.bf16.msra.mxu2 %v2801_v42  ;;  %v2604_v41 = vld [vmem:[#allocation4 + $0x10] sm:$0xf] }
  0xe7   :  { %v3232_v42 = vld [vmem:[#allocation4 + $0x2c] sm:$0xf0]  ;;  %1948 = vmatpush.bf16.msrb.mxu3 %v2921_v37  ;;  %v2676_v37 = vld [vmem:[#allocation4 + $0x98] sm:$0xf] }
  0xe8   :  { %v2605_v56 = vor.u32 %v3232_v42, %v2604_v41  ;;  %1923 = vmatpush.bf16.msrb.mxu1 %v2885_v6  ;;  %v3245_v41 = vld [vmem:[#allocation4 + $0x9c] sm:$0xf] }
  0xe9   :  { %v2678_v42 = vld [vmem:[#allocation4 + $0xb8] sm:$0xf0] }
  0xea   :  { %1958 = vmatpush.bf16.msra.mxu0 %v2765_v51  ;;  %1984 = vmatpush.bf16.msra.mxu2 %v2769_v52  ;;  %v3285_v51 = vld [vmem:[#allocation4 + $0x1dc] sm:$0xf] }
  0xeb   :  { %v3509_v3 = vpop.f32.mrf.mxu0  ;;  %v2838_v52 = vld [vmem:[#allocation4 + $0x1f8] sm:$0xf0]  ;;  %1949 = vmatpush.bf16.msrb.mxu3 %v2889_v53 }
  0xec   :  { %v3511_v5 = vpop.f32.mrf.mxu1  ;;  %v2841_v62 = vor.u32 %v3285_v51, %v2838_v52  ;;  %v968_v0 = vadd.f32 %v3509_v3, %v185_v54  ;;  %1924 = vmatpush.bf16.msrb.mxu1 %v2853_v4  ;;  %v3237_v6 = vld [vmem:[#allocation4 + $0x5c] sm:$0xf]  ;;  %v2612_v54 = vld [vmem:[#allocation4 + $0x18] sm:$0xf] }
  0xed   :  { %v2649_v53 = vor.u32 %v3237_v6, %v2646_v50  ;;  %v3349_v6 = vld [vmem:[#allocation4 + $0x3dc] sm:$0xf] }
  0xee   :  { %1959 = vmatpush.bf16.msra.mxu0 %v2733_v39  ;;  %1985 = vmatpush.bf16.msra.mxu2 %v2737_v61  ;;  %v3291_v39 = vld [vmem:[#allocation4 + $0x20c] sm:$0xf]  ;;  %v2837_v61 = vor.u32 %v3289_v15, %v2836_v14  ;;  %v981_v11 = vadd.f32 %v3511_v5, %v968_v0  ;;  %v2741_v5 = vor.u32 %v3265_v20, %v2740_v18  ;;  %v3241_v14 = vld [vmem:[#allocation4 + $0x74] sm:$0xf0]  ;;  %v3328_v20 = vld [vmem:[#allocation4 + $0x32c] sm:$0xf0] }
  0xef   :  { %v2857_v7 = vor.u32 %v3291_v39, %v2854_v44  ;;  %v2645_v52 = vor.u32 %v3241_v14, %v2644_v46  ;;  %v3296_v46 = vld [vmem:[#allocation4 + $0x22c] sm:$0xf0]  ;;  %v3353_v14 = vld [vmem:[#allocation4 + $0x3f4] sm:$0xf0]  ;;  %v3094_v50 = vld [vmem:[#allocation4 + $0x3f8] sm:$0xf0] }
  0xf1   :  { %1912 = vmatmul.bf16.vlgmr.msrb.gmra.mxu0 %v3505_v28  ;;  %1938 = vmatmul.bf16.vlgmr.msrb.gmra.mxu2 %v3505_v28 }
  0xf2   :  { %1960 = vmatpush.bf16.msra.mxu0 %v2701_v9  ;;  %1986 = vmatpush.bf16.msra.mxu2 %v2705_v10  ;;  %v2809_v9 = vor.u32 %v3277_v2, %v2806_v40  ;;  %v2772_v10 = vld [vmem:[#allocation4 + $0x158] sm:$0xf]  ;;  %v3052_v40 = vld [vmem:[#allocation4 + $0x390] sm:$0xf] }
  0xf3   :  { %v3515_v21 = vpop.f32.mrf.mxu2  ;;  %v969_v36 = vpop.f32.mrf.mxu0  ;;  %1950 = vmatpush.bf16.msrb.mxu3 %v2857_v7  ;;  %v2773_v3 = vor.u32 %v3273_v12, %v2772_v10  ;;  %v3344_v7 = vld [vmem:[#allocation4 + $0x3ac] sm:$0xf0] }
  0xf4   :  { %v3517_v26 = vpop.f32.mrf.mxu3  ;;  %v982_v38 = vpop.f32.mrf.mxu1  ;;  %v994_v19 = vadd.f32 %v3515_v21, %v981_v11  ;;  %v2713_v21 = vor.u32 %v3253_v31, %v2710_v32  ;;  %v3053_v10 = vor.u32 %v3344_v7, %v3052_v40  ;;  %v3020_v12 = vld [vmem:[#allocation4 + $0x350] sm:$0xf]  ;;  %v2998_v40 = vld [vmem:[#allocation4 + $0x338] sm:$0xf0] }
  0xf5   :  { %v3249_v38 = vld [vmem:[#allocation4 + $0xb4] sm:$0xf0]  ;;  %v2924_v32 = vld [vmem:[#allocation4 + $0x290] sm:$0xf] }
  0xf6   :  { %1961 = vmatpush.bf16.msra.mxu0 %v2669_v24  ;;  %1987 = vmatpush.bf16.msra.mxu2 %v2673_v25  ;;  %v2745_v24 = vor.u32 %v3261_v22, %v2742_v23  ;;  %v2708_v25 = vld [vmem:[#allocation4 + $0xd8] sm:$0xf]  ;;  %v1007_v27 = vadd.f32 %v3517_v26, %v994_v19  ;;  %v2681_v26 = vor.u32 %v3245_v41, %v2678_v42  ;;  %v2988_v19 = vld [vmem:[#allocation4 + $0x310] sm:$0xf]  ;;  %v3324_v22 = vld [vmem:[#allocation4 + $0x314] sm:$0xf] }
  0xf7   :  { %v2709_v36 = vor.u32 %v3257_v30, %v2708_v25  ;;  %v2990_v23 = vld [vmem:[#allocation4 + $0x330] sm:$0xf0]  ;;  %v2956_v25 = vld [vmem:[#allocation4 + $0x2d0] sm:$0xf] }
  0xf8   :  { %v2958_v30 = vld [vmem:[#allocation4 + $0x2f0] sm:$0xf0]  ;;  %v3304_v41 = vld [vmem:[#allocation4 + $0x26c] sm:$0xf0] }
  0xf9   :  { %v3300_v42 = vld [vmem:[#allocation4 + $0x254] sm:$0xf] }
  0xfa   :  { %1962 = vmatpush.bf16.msra.mxu0 %v2637_v1  ;;  %1988 = vmatpush.bf16.msra.mxu2 %v2641_v45  ;;  %v2677_v45 = vor.u32 %v3249_v38, %v2676_v37  ;;  %v2892_v38 = vld [vmem:[#allocation4 + $0x250] sm:$0xf] }
  0xfb   :  { %v995_v55 = vpop.f32.mrf.mxu2 }
  0xfc   :  { %v1008_v58 = vpop.f32.mrf.mxu3  ;;  %v3233_v55 = vld [vmem:[#allocation4 + $0x34] sm:$0xf0] }
  0xfd   :  { %v3084_v58 = vld [vmem:[#allocation4 + $0x3d0] sm:$0xf]  ;;  %v2613_v60 = vor.u32 %v3233_v55, %v2612_v54  ;;  %v3060_v54 = vld [vmem:[#allocation4 + $0x398] sm:$0xf] }
  0xfe   :  { %1963 = vmatpush.bf16.msra.mxu0 %v2605_v56  ;;  %1989 = vmatpush.bf16.msra.mxu2 %v2609_v57  ;;  %v3229_v56 = vld [vmem:[#allocation4 + $0x1c] sm:$0xf]  ;;  %v3345_v55 = vld [vmem:[#allocation4 + $0x3b4] sm:$0xf0] }
  0xff   :  { %v2614_v57 = vld [vmem:[#allocation4 + $0x38] sm:$0xf0] }
 0x100   :  { %v2617_v39 = vor.u32 %v3229_v56, %v2614_v57  ;;  %v3341_v56 = vld [vmem:[#allocation4 + $0x39c] sm:$0xf] }
 0x101   :  { %1964 = vmatmul.bf16.vlgmr.msra.gmra.mxu0 %v3505_v28  ;;  %1990 = vmatmul.bf16.vlgmr.msra.gmra.mxu2 %v3505_v28  ;;  %v3062_v57 = vld [vmem:[#allocation4 + $0x3b8] sm:$0xf0] }
 0x102   :  { %2008 = vmatpush.bf16.msrb.mxu0 %v2837_v61  ;;  %2034 = vmatpush.bf16.msrb.mxu2 %v2841_v62  ;;  %v3352_v61 = vld [vmem:[#allocation4 + $0x3ec] sm:$0xf0]  ;;  %v3348_v62 = vld [vmem:[#allocation4 + $0x3d4] sm:$0xf] }
 0x103   :  { %v3085_v35 = vor.u32 %v3352_v61, %v3084_v58  ;;  %v3089_v2 = vor.u32 %v3348_v62, %v3086_v63  ;;  %v3061_v58 = vor.u32 %v3345_v55, %v3060_v54  ;;  %v3333_v61 = vld [vmem:[#allocation4 + $0x35c] sm:$0xf] }
 0x104   :  { %v3030_v62 = vld [vmem:[#allocation4 + $0x378] sm:$0xf0] }
 0x106   :  { %2009 = vmatpush.bf16.msrb.mxu0 %v2805_v8  ;;  %2035 = vmatpush.bf16.msrb.mxu2 %v2809_v9  ;;  %v3340_v8 = vld [vmem:[#allocation4 + $0x394] sm:$0xf] }
 0x107   :  { %v3054_v9 = vld [vmem:[#allocation4 + $0x3b0] sm:$0xf0] }
 0x108   :  { %v3057_v11 = vor.u32 %v3340_v8, %v3054_v9  ;;  %v2964_v9 = vld [vmem:[#allocation4 + $0x2d8] sm:$0xf] }
 0x10a   :  { %2010 = vmatpush.bf16.msrb.mxu0 %v2773_v3  ;;  %2036 = vmatpush.bf16.msrb.mxu2 %v2777_v17  ;;  %v3022_v3 = vld [vmem:[#allocation4 + $0x370] sm:$0xf0]  ;;  %v3021_v17 = vor.u32 %v3336_v13, %v3020_v12  ;;  %v2966_v12 = vld [vmem:[#allocation4 + $0x2f8] sm:$0xf0] }
 0x10b   :  { %v1019_v29 = vpop.f32.mrf.mxu0  ;;  %v3025_v18 = vor.u32 %v3332_v16, %v3022_v3  ;;  %v2932_v3 = vld [vmem:[#allocation4 + $0x298] sm:$0xf] }
 0x10c   :  { %v1032_v33 = vpop.f32.mrf.mxu1  ;;  %v1020_v34 = vadd.f32 %v1019_v29, %v1007_v27  ;;  %v3320_v27 = vld [vmem:[#allocation4 + $0x2ec] sm:$0xf0]  ;;  %v3316_v29 = vld [vmem:[#allocation4 + $0x2d4] sm:$0xf] }
 0x10d   :  { %v2961_v31 = vor.u32 %v3316_v29, %v2958_v30  ;;  %v2868_v30 = vld [vmem:[#allocation4 + $0x218] sm:$0xf] }
 0x10e   :  { %2011 = vmatpush.bf16.msrb.mxu0 %v2741_v5  ;;  %2037 = vmatpush.bf16.msrb.mxu2 %v2745_v24  ;;  %v1033_v43 = vadd.f32 %v1032_v33, %v1020_v34  ;;  %v2989_v5 = vor.u32 %v3328_v20, %v2988_v19  ;;  %v2993_v24 = vor.u32 %v3324_v22, %v2990_v23  ;;  %v3312_v33 = vld [vmem:[#allocation4 + $0x2ac] sm:$0xf0]  ;;  %v3308_v34 = vld [vmem:[#allocation4 + $0x294] sm:$0xf]  ;;  %v2934_v19 = vld [vmem:[#allocation4 + $0x2b8] sm:$0xf0] }
 0x10f   :  { %v2900_v23 = vld [vmem:[#allocation4 + $0x258] sm:$0xf] }
 0x112   :  { %2012 = vmatpush.bf16.msrb.mxu0 %v2709_v36  ;;  %2038 = vmatpush.bf16.msrb.mxu2 %v2713_v21  ;;  %v2926_v36 = vld [vmem:[#allocation4 + $0x2b0] sm:$0xf0]  ;;  %v2925_v21 = vor.u32 %v3312_v33, %v2924_v32  ;;  %v2870_v32 = vld [vmem:[#allocation4 + $0x238] sm:$0xf0] }
 0x113   :  { %v1045_v1 = vpop.f32.mrf.mxu2  ;;  %v1021_v49 = vpop.f32.mrf.mxu0  ;;  %v2929_v37 = vor.u32 %v3308_v34, %v2926_v36 }
 0x114   :  { %v1046_v47 = vadd.f32 %v1045_v1, %v1033_v43  ;;  %v1058_v48 = vpop.f32.mrf.mxu3  ;;  %v1034_v15 = vpop.f32.mrf.mxu1  ;;  %v2894_v43 = vld [vmem:[#allocation4 + $0x270] sm:$0xf0]  ;;  %v2893_v1 = vor.u32 %v3304_v41, %v2892_v38  ;;  %v3092_v49 = vld [vmem:[#allocation4 + $0x3d8] sm:$0xf] }
 0x116   :  { %v1059_v51 = vadd.f32 %v1058_v48, %v1046_v47  ;;  %2013 = vmatpush.bf16.msrb.mxu0 %v2677_v45  ;;  %2039 = vmatpush.bf16.msrb.mxu2 %v2681_v26  ;;  %v2897_v45 = vor.u32 %v3300_v42, %v2894_v43  ;;  %v2860_v26 = vld [vmem:[#allocation4 + $0x210] sm:$0xf]  ;;  %v3292_v47 = vld [vmem:[#allocation4 + $0x214] sm:$0xf] }
 0x117   :  { %v2862_v48 = vld [vmem:[#allocation4 + $0x230] sm:$0xf0]  ;;  %v2861_v15 = vor.u32 %v3296_v46, %v2860_v26 }
 0x118   :  { %3362 = vtanh.f32 %v1059_v51  ;;  %v2865_v51 = vor.u32 %v3292_v47, %v2862_v48  ;;  %v1194_v48 = vld [vmem:[%s3571_s4] sm:$0xff] }
 0x11a   :  { %2014 = vmatpush.bf16.msrb.mxu0 %v2645_v52  ;;  %2040 = vmatpush.bf16.msrb.mxu2 %v2649_v53  ;;  %v3093_v52 = vor.u32 %v3353_v14, %v3092_v49  ;;  %v3097_v53 = vor.u32 %v3349_v6, %v3094_v50  ;;  %v1196_v49 = vperm.slane %v1194_v48, 0 }
 0x11b   :  { %v1047_v59 = vpop.f32.mrf.mxu2 }
 0x11c   :  { %v1060_v44 = vpop.f32.mrf.mxu3  ;;  %v3065_v59 = vor.u32 %v3341_v56, %v3062_v57  ;;  %v1198_v57 = vperm.slane %v1194_v48, 2 }
 0x11d   :  { %v3033_v44 = vor.u32 %v3333_v61, %v3030_v62  ;;  %v1199_v61 = vperm.slane %v1194_v48, 3 }
 0x11e   :  { %v3363_v0 = vpop.eup %3362  ;;  %2015 = vmatpush.bf16.msrb.mxu0 %v2613_v60  ;;  %2041 = vmatpush.bf16.msrb.mxu2 %v2617_v39  ;;  %v3028_v60 = vld [vmem:[#allocation4 + $0x358] sm:$0xf] }
 0x11f   :  { %v3528_v4 = vpack.c.bf16 %v3363_v0, %v3363_v0  ;;  %v3337_v39 = vld [vmem:[#allocation4 + $0x374] sm:$0xf0] }
 0x120   :  { %v3029_v63 = vor.u32 %v3337_v39, %v3028_v60  ;;  %v2996_v0 = vld [vmem:[#allocation4 + $0x318] sm:$0xf] }
 0x121   :  { %1873 = vmatmul.bf16.vlgmr.msra.gmra.mxu1 %v3528_v4  ;;  %1899 = vmatmul.bf16.vlgmr.msra.gmra.mxu3 %v3528_v4 }
 0x122   :  { %1969 = vmatpush.bf16.msra.mxu1 %v3085_v35  ;;  %1995 = vmatpush.bf16.msra.mxu3 %v3089_v2  ;;  %v3329_v35 = vld [vmem:[#allocation4 + $0x334] sm:$0xf0]  ;;  %v3325_v2 = vld [vmem:[#allocation4 + $0x31c] sm:$0xf] }
 0x123   :  { %2016 = vmatmul.bf16.vlgmr.msrb.gmra.mxu0 %v3505_v28  ;;  %2042 = vmatmul.bf16.vlgmr.msrb.gmra.mxu2 %v3505_v28  ;;  %v2957_v28 = vor.u32 %v3320_v27, %v2956_v25  ;;  %v2997_v7 = vor.u32 %v3329_v35, %v2996_v0  ;;  %v3001_v8 = vor.u32 %v3325_v2, %v2998_v40  ;;  %v2902_v25 = vld [vmem:[#allocation4 + $0x278] sm:$0xf0]  ;;  %v1200_v2 = vperm.slane %v1194_v48, 4 }
 0x126   :  { %1970 = vmatpush.bf16.msra.mxu1 %v3053_v10  ;;  %1996 = vmatpush.bf16.msra.mxu3 %v3057_v11  ;;  %v3321_v10 = vld [vmem:[#allocation4 + $0x2f4] sm:$0xf0]  ;;  %v3317_v11 = vld [vmem:[#allocation4 + $0x2dc] sm:$0xf] }
 0x127   :  { %v2965_v13 = vor.u32 %v3321_v10, %v2964_v9  ;;  %v2969_v16 = vor.u32 %v3317_v11, %v2966_v12  ;;  %v1201_v9 = vperm.slane %v1194_v48, 5 }
 0x12a   :  { %1971 = vmatpush.bf16.msra.mxu1 %v3021_v17  ;;  %1997 = vmatpush.bf16.msra.mxu3 %v3025_v18  ;;  %v3313_v17 = vld [vmem:[#allocation4 + $0x2b4] sm:$0xf0]  ;;  %v3309_v18 = vld [vmem:[#allocation4 + $0x29c] sm:$0xf] }
 0x12b   :  { %v2933_v20 = vor.u32 %v3313_v17, %v2932_v3  ;;  %v2937_v22 = vor.u32 %v3309_v18, %v2934_v19  ;;  %v1202_v17 = vperm.slane %v1194_v48, 6 }
 0x12e   :  { %1972 = vmatpush.bf16.msra.mxu1 %v2989_v5  ;;  %1998 = vmatpush.bf16.msra.mxu3 %v2993_v24  ;;  %v3305_v5 = vld [vmem:[#allocation4 + $0x274] sm:$0xf0]  ;;  %v3301_v24 = vld [vmem:[#allocation4 + $0x25c] sm:$0xf] }
 0x12f   :  { %v2901_v27 = vor.u32 %v3305_v5, %v2900_v23  ;;  %v2905_v29 = vor.u32 %v3301_v24, %v2902_v25 }
 0x131   :  { %1925 = vmatmul.bf16.vlgmr.msrb.gmra.mxu1 %v3528_v4  ;;  %1951 = vmatmul.bf16.vlgmr.msrb.gmra.mxu3 %v3528_v4 }
 0x132   :  { %1973 = vmatpush.bf16.msra.mxu1 %v2957_v28  ;;  %1999 = vmatpush.bf16.msra.mxu3 %v2961_v31  ;;  %v3297_v28 = vld [vmem:[#allocation4 + $0x234] sm:$0xf0]  ;;  %v3293_v31 = vld [vmem:[#allocation4 + $0x21c] sm:$0xf] }
 0x133   :  { %v2869_v33 = vor.u32 %v3297_v28, %v2868_v30  ;;  %v2873_v34 = vor.u32 %v3293_v31, %v2870_v32 }
 0x136   :  { %1974 = vmatpush.bf16.msra.mxu1 %v2925_v21  ;;  %2000 = vmatpush.bf16.msra.mxu3 %v2929_v37 }
 0x13a   :  { %1975 = vmatpush.bf16.msra.mxu1 %v2893_v1  ;;  %2001 = vmatpush.bf16.msra.mxu3 %v2897_v45 }
 0x13e   :  { %1976 = vmatpush.bf16.msra.mxu1 %v2861_v15  ;;  %2002 = vmatpush.bf16.msra.mxu3 %v2865_v51 }
 0x141   :  { %1977 = vmatmul.bf16.vlgmr.msra.gmra.mxu1 %v3528_v4  ;;  %2003 = vmatmul.bf16.vlgmr.msra.gmra.mxu3 %v3528_v4 }
 0x142   :  { %2021 = vmatpush.bf16.msrb.mxu1 %v3093_v52  ;;  %2047 = vmatpush.bf16.msrb.mxu3 %v3097_v53 }
 0x146   :  { %2022 = vmatpush.bf16.msrb.mxu1 %v3061_v58  ;;  %2048 = vmatpush.bf16.msrb.mxu3 %v3065_v59 }
 0x14a   :  { %2023 = vmatpush.bf16.msrb.mxu1 %v3029_v63  ;;  %2049 = vmatpush.bf16.msrb.mxu3 %v3033_v44 }
 0x14e   :  { %2024 = vmatpush.bf16.msrb.mxu1 %v2997_v7  ;;  %2050 = vmatpush.bf16.msrb.mxu3 %v3001_v8 }
 0x152   :  { %2025 = vmatpush.bf16.msrb.mxu1 %v2965_v13  ;;  %2051 = vmatpush.bf16.msrb.mxu3 %v2969_v16 }
 0x156   :  { %2026 = vmatpush.bf16.msrb.mxu1 %v2933_v20  ;;  %2052 = vmatpush.bf16.msrb.mxu3 %v2937_v22  ;;  %v1203_v20 = vperm.slane %v1194_v48, 7 }
 0x15a   :  { %2027 = vmatpush.bf16.msrb.mxu1 %v2901_v27  ;;  %2053 = vmatpush.bf16.msrb.mxu3 %v2905_v29 }
 0x15e   :  { %2028 = vmatpush.bf16.msrb.mxu1 %v2869_v33  ;;  %2054 = vmatpush.bf16.msrb.mxu3 %v2873_v34  ;;  %v1861_v36 = vpop.f32.mrf.mxu0 }
 0x15f   :  { %v1862_v14 = vadd.f32 %v1861_v36, %v1196_v49 }
 0x161   :  { %2029 = vmatmul.bf16.vlgmr.msrb.gmra.mxu1 %v3528_v4  ;;  %2055 = vmatmul.bf16.vlgmr.msrb.gmra.mxu3 %v3528_v4  ;;  %v1197_v4 = vperm.slane %v1194_v48, 1 }
 0x164   :  { %v1887_v21 = vpop.f32.mrf.mxu2 }
 0x165   :  { %v1888_v51 = vadd.f32 %v1887_v21, %v1197_v4 }
 0x166   :  { %v1863_v37 = vpop.f32.mrf.mxu0 }
 0x16c   :  { %v1889_v38 = vpop.f32.mrf.mxu2 }
 0x16e   :  { %v1913_v41 = vpop.f32.mrf.mxu0 }
 0x16f   :  { %v1914_v59 = vadd.f32 %v1913_v41, %v1198_v57 }
 0x174   :  { %v1939_v42 = vpop.f32.mrf.mxu2 }
 0x175   :  { %v1940_v63 = vadd.f32 %v1939_v42, %v1199_v61 }
 0x176   :  { %v1915_v43 = vpop.f32.mrf.mxu0 }
 0x17c   :  { %v1941_v1 = vpop.f32.mrf.mxu2 }
 0x17e   :  { %v1965_v45 = vpop.f32.mrf.mxu0 }
 0x17f   :  { %v1966_v7 = vadd.f32 %v1965_v45, %v1200_v2 }
 0x184   :  { %v1991_v26 = vpop.f32.mrf.mxu2 }
 0x185   :  { %v1992_v11 = vadd.f32 %v1991_v26, %v1201_v9 }
 0x186   :  { %v1967_v46 = vpop.f32.mrf.mxu0 }
 0x18c   :  { %v1993_v47 = vpop.f32.mrf.mxu2 }
 0x19e   :  { %v1874_v6 = vpop.f32.mrf.mxu1 }
 0x19f   :  { %v1875_v50 = vadd.f32 %v1874_v6, %v1862_v14 }
 0x1a0   :  { %v2017_v15 = vpop.f32.mrf.mxu0 }
 0x1a1   :  { %2060 = vst [vmem:[%s3572_s5] sm:$0xff] %v1875_v50  ;;  %v2018_v18 = vadd.f32 %v2017_v15, %v1202_v17 }
 0x1a4   :  { %v1900_v52 = vpop.f32.mrf.mxu3 }
 0x1a5   :  { %v1901_v53 = vadd.f32 %v1900_v52, %v1888_v51 }
 0x1a6   :  { %v1876_v54 = vpop.f32.mrf.mxu1  ;;  %v2043_v55 = vpop.f32.mrf.mxu2 }
 0x1a7   :  { %2061 = vst [vmem:[%s3572_s5 + $0x8] sm:$0xff] %v1901_v53  ;;  %v2044_v23 = vadd.f32 %v2043_v55, %v1203_v20 }
 0x1a8   :  { %v2019_v56 = vpop.f32.mrf.mxu0 }
 0x1ac   :  { %v1902_v58 = vpop.f32.mrf.mxu3 }
 0x1ae   :  { %v1926_v60 = vpop.f32.mrf.mxu1  ;;  %v2045_v39 = vpop.f32.mrf.mxu2 }
 0x1af   :  { %v1927_v62 = vadd.f32 %v1926_v60, %v1914_v59 }
 0x1b1   :  { %2062 = vst [vmem:[%s3572_s5 + $0x10] sm:$0xff] %v1927_v62 }
 0x1b4   :  { %v1952_v44 = vpop.f32.mrf.mxu3 }
 0x1b5   :  { %v1953_v0 = vadd.f32 %v1952_v44, %v1940_v63 }
 0x1b6   :  { %v1928_v35 = vpop.f32.mrf.mxu1 }
 0x1b7   :  { %2063 = vst [vmem:[%s3572_s5 + $0x18] sm:$0xff] %v1953_v0 }
 0x1bc   :  { %v1954_v40 = vpop.f32.mrf.mxu3 }
 0x1be   :  { %v1978_v8 = vpop.f32.mrf.mxu1 }
 0x1bf   :  { %v1979_v10 = vadd.f32 %v1978_v8, %v1966_v7 }
 0x1c1   :  { %2064 = vst [vmem:[%s3572_s5 + $0x20] sm:$0xff] %v1979_v10 }
 0x1c4   :  { %v2004_v12 = vpop.f32.mrf.mxu3 }
 0x1c5   :  { %v2005_v13 = vadd.f32 %v2004_v12, %v1992_v11 }
 0x1c6   :  { %v1980_v16 = vpop.f32.mrf.mxu1 }
 0x1c7   :  { %2065 = vst [vmem:[%s3572_s5 + $0x28] sm:$0xff] %v2005_v13 }
 0x1cc   :  { %v2006_v3 = vpop.f32.mrf.mxu3 }
 0x1de   :  { %v2030_v19 = vpop.f32.mrf.mxu1 }
 0x1df   :  { %v2031_v22 = vadd.f32 %v2030_v19, %v2018_v18 }
 0x1e1   :  { %2066 = vst [vmem:[%s3572_s5 + $0x30] sm:$0xff] %v2031_v22 }
 0x1e4   :  { %v2056_v5 = vpop.f32.mrf.mxu3 }
 0x1e5   :  { %v2057_v24 = vadd.f32 %v2056_v5, %v2044_v23 }
 0x1e6   :  { %v2032_v25 = vpop.f32.mrf.mxu1 }
 0x1e7   :  { %2067 = vst [vmem:[%s3572_s5 + $0x38] sm:$0xff] %v2057_v24 }
 0x1ec   :  { %v2058_v27 = vpop.f32.mrf.mxu3 }
 0x1ed   :  { %2072 = vsyncpa [#allocation3], 1 }
 0x1ee   :  { %2073 = vsyncpa [#allocation5], 1 }

</bundles_post_ra>
